<compile_context>
chip_gen: v6e
topology: v6e:2x2x1
jax: 0.10.0
libtpu: 0.0.40
codegen_flags: <defaults>
</compile_context>

<pallas_src>
import numpy as np
import jax
import jax.numpy as jnp
from jax.experimental import pallas as pl
from jax.experimental.pallas import tpu as pltpu


LANE = 128
BN_EPS = 1e-5
NEG_SLOPE = 0.01          # nn.LeakyReLU() default
MICRO_BATCH = 8           # rows per independent forward() call == f32 sublane count


def _round_up(x, m):
    return (x + m - 1) // m * m


def layer_sizes(seq_length, hidden_layers, hidden_size):
    sizes = [seq_length]
    hs = hidden_size
    for _ in range(hidden_layers):
        sizes.append(hs)
        hs //= 2
    return sizes


# --------------------------------------------------------------------------- packing plan

def make_plan(seq_length, hidden_layers, hidden_size, latent_dim):
    sizes = layer_sizes(seq_length, hidden_layers, hidden_size)
    rsizes = list(reversed(sizes))
    pad = lambda d: _round_up(d, LANE)
    p_latent = pad(latent_dim)

    # Linear blocks in kernel consumption order: (din, dout, pdin, pdout).
    # Each block is stored at lane-padded (pdin x pdout) with zero pad rows/cols so every
    # activation can stay at the full padded 128-lane width through the whole network.
    blocks = []
    for i in range(1, len(sizes)):                                   # encoder (bias dropped)
        blocks.append((sizes[i - 1], sizes[i], pad(sizes[i - 1]), pad(sizes[i])))
    blocks.append((sizes[-1], 2 * latent_dim, pad(sizes[-1]), 2 * p_latent))  # fused [mu|logvar]
    blocks.append((latent_dim, rsizes[0], p_latent, pad(rsizes[0])))          # decoder_in
    for i in range(1, len(rsizes)):                                  # decoder (bias dropped)
        blocks.append((rsizes[i - 1], rsizes[i], pad(rsizes[i - 1]), pad(rsizes[i])))

    w_offs, off = [], 0
    for (_, _, _, pdout) in blocks:
        w_offs.append(off)
        off += pdout
    w_cols = off
    w_rows = _round_up(max(pdin for (_, _, pdin, _) in blocks), 16)  # bf16 sublane tile

    # Vector slab segments (kernel order), each stored at padded width, pad lanes zero.
    vec_widths = []                                                  # (actual, padded)
    for i in range(1, len(sizes)):
        vec_widths += [(sizes[i], pad(sizes[i]))] * 2                # gamma, beta
    vec_widths.append((2 * latent_dim, 2 * p_latent))                # fused head bias
    vec_widths.append((rsizes[0], pad(rsizes[0])))                   # decoder_in bias
    for i in range(1, len(rsizes)):
        vec_widths += [(rsizes[i], pad(rsizes[i]))] * 2
    v_offs, off = [], 0
    for (_, pw) in vec_widths:
        v_offs.append(off)
        off += pw
    v_cols = off

    return dict(
        n_layers=hidden_layers, latent_dim=latent_dim, p_latent=p_latent,
        in_dim=seq_length, p_in=pad(seq_length),
        out_dim=rsizes[-1], p_out=pad(rsizes[-1]),
        blocks=blocks, w_offs=w_offs, w_rows=w_rows, w_cols=w_cols,
        vec_widths=vec_widths, v_offs=v_offs, v_cols=v_cols,
    )


# -------------------------------------------------------------------------------- kernel

def make_vae_kernel(plan, groups_per_step):
    n_layers = plan["n_layers"]
    p_latent = plan["p_latent"]
    blocks, w_offs = plan["blocks"], plan["w_offs"]
    vec_widths, v_offs = plan["vec_widths"], plan["v_offs"]
    G, MB = groups_per_step, MICRO_BATCH

    def kernel(x_ref, eps_ref, w_ref, v_ref, o_ref):
        # Static, lane/sublane-aligned slices of the packed slabs (full padded widths).
        def weight(idx):
            _, _, pdin, pdout = blocks[idx]
            off = w_offs[idx]
            return w_ref[0:pdin, off:off + pdout]            # bf16 (pdin, pdout)

        def vec(idx):
            off = v_offs[idx]
            pw = vec_widths[idx][1]
            return v_ref[0:1, off:off + pw]                  # f32 (1, pw)

        def matmul(h, idx):
            # bf16 operands into the MXU, f32 accumulation; everything else stays f32.
            return jnp.dot(h.astype(jnp.bfloat16), weight(idx),
                           preferred_element_type=jnp.float32)

        def batchnorm(h, gamma, beta):
            # Training-mode BatchNorm1d, independently per micro-batch (group of MB=8 rows):
            # a per-group sublane reduce.  var = E[x^2]-E[x]^2 (clamped), gamma folded into
            # the rsqrt scale.  Zero gamma/beta on pad lanes keeps them at exactly 0.
            w = h.shape[-1]
            hg = h.reshape(G, MB, w)
            mean = jnp.mean(hg, axis=1, keepdims=True)
            var = jnp.mean(hg * hg, axis=1, keepdims=True) - mean * mean
            var = jnp.maximum(var, 0.0)                      # guard f32 cancellation -> NaN
            scale = jax.lax.rsqrt(var + BN_EPS) * gamma
            return ((hg - mean) * scale + beta).reshape(G * MB, w)
            # TODO(synk): for very large G the two sublane reductions could move to the MXU
            #             via a constant segment-indicator matmul.

        wi = 0
        vi = 0
        h = x_ref[...]                                       # bf16 (G*MB, p_in)

        # ---- encoder: [Linear(no bias; cancelled by BN) -> BatchNorm -> ReLU] * n_layers
        for _ in range(n_layers):
            h = matmul(h, wi); wi += 1
            h = batchnorm(h, vec(vi), vec(vi + 1)); vi += 2
            h = jnp.maximum(h, 0.0)

        # ---- fused latent heads: one matmul producing lane-aligned [mu | logvar]
        hl = matmul(h, wi) + vec(vi); wi += 1; vi += 1
        mu = hl[:, :p_latent]                                # tile-boundary slices (free)
        logvar = hl[:, p_latent:2 * p_latent]

        # ---- reparameterize: z = mu + eps * exp(0.5 * logvar); pad lanes stay exactly 0
        z = mu + eps_ref[...] * jnp.exp(0.5 * logvar)

        # ---- decoder_in (pad rows of its weight block are zero, so padded z is harmless)
        h = matmul(z, wi) + vec(vi); wi += 1; vi += 1

        # ---- decoder: [Linear(no bias) -> BatchNorm -> LeakyReLU(0.01)] * n_layers
        for _ in range(n_layers):
            h = matmul(h, wi); wi += 1
            h = batchnorm(h, vec(vi), vec(vi + 1)); vi += 2
            h = jnp.where(h > 0, h, NEG_SLOPE * h)

        o_ref[...] = h                                       # lane-dense (G*MB, p_out) store

    return kernel


def vae_forward(x, eps, w_slab, v_slab, plan, *, groups_per_step=4):
    total, seq = x.shape
    assert seq == plan["in_dim"]
    rows = groups_per_step * MICRO_BATCH
    assert total % rows == 0, "total rows must be a whole number of grid steps"
    assert rows % 16 == 0, "keep the bf16 activation block sublane-tile aligned"
    num_steps = total // rows
    p_in, p_latent, p_out = plan["p_in"], plan["p_latent"], plan["p_out"]

    # Lane-pad activations.  x -> bf16 (only feeds the first MXU matmul, halves its DMA);
    # eps stays f32 (feeds VPU math) and is zero-padded so z's pad lanes stay exactly 0.
    x_p = jnp.zeros((total, p_in), jnp.bfloat16).at[:, :seq].set(x.astype(jnp.bfloat16))
    eps_p = jnp.zeros((total, p_latent), jnp.float32).at[:, :plan["latent_dim"]].set(eps)

    out = pl.pallas_call(
        make_vae_kernel(plan, groups_per_step),
        out_shape=jax.ShapeDtypeStruct((total, p_out), jnp.float32),
        grid=(num_steps,),
        in_specs=[
            pl.BlockSpec((rows, p_in), lambda i: (i, 0)),                       # per-step
            pl.BlockSpec((rows, p_latent), lambda i: (i, 0)),                   # per-step
            pl.BlockSpec((plan["w_rows"], plan["w_cols"]), lambda i: (0, 0)),   # resident
            pl.BlockSpec((1, plan["v_cols"]), lambda i: (0, 0)),                # resident
        ],
        out_specs=pl.BlockSpec((rows, p_out), lambda i: (i, 0)),
        compiler_params=pltpu.CompilerParams(
            dimension_semantics=("parallel",),            # shards steps over v7x's 2 TCs
            vmem_limit_bytes=32 * 1024 * 1024),           # within v7x 64 MiB / scoped default
    )(x_p, eps_p, w_slab, v_slab)
    return out[:, :plan["out_dim"]]


# ---------------------------------------------------------------------------- parameters

def init_params(key, seq_length, hidden_layers, hidden_size, latent_dim):
    """Deterministic synthetic parameters mirroring the PyTorch module (weights stored as
    (in_features, out_features) so y = x @ W + b)."""
    sizes = layer_sizes(seq_length, hidden_layers, hidden_size)
    rsizes = list(reversed(sizes))
    n_lin = (len(sizes) - 1) + 3 + (len(rsizes) - 1)
    n_bn = (len(sizes) - 1) + (len(rsizes) - 1)
    keys = iter(jax.random.split(key, 2 * n_lin + 2 * n_bn))

    def lin(din, dout):
        w = jax.random.normal(next(keys), (din, dout), jnp.float32) / np.sqrt(din)
        b = 0.01 * jax.random.normal(next(keys), (1, dout), jnp.float32)
        return w, b

    def bn(d):
        g = 1.0 + 0.1 * jax.random.normal(next(keys), (1, d), jnp.float32)
        bt = 0.1 * jax.random.normal(next(keys), (1, d), jnp.float32)
        return g, bt

    params = {"enc": [], "dec": []}
    for i in range(1, len(sizes)):
        w, b = lin(sizes[i - 1], sizes[i]); g, bt = bn(sizes[i])
        params["enc"].append((w, b, g, bt))
    params["mu"] = lin(sizes[-1], latent_dim)
    params["var"] = lin(sizes[-1], latent_dim)
    params["dec_in"] = lin(latent_dim, sizes[-1])
    for i in range(1, len(rsizes)):
        w, b = lin(rsizes[i - 1], rsizes[i]); g, bt = bn(rsizes[i])
        params["dec"].append((w, b, g, bt))
    return params


def pack_params(params, plan):
    """Pack all parameters into one bf16 weight slab and one f32 vector slab, each block
    lane-padded to 128 with zero pad rows/cols.  mu/logvar head is packed so mu occupies
    the first 128-lane sub-block and logvar the second (lane-aligned split in the kernel).
    Encoder/decoder Linear biases are intentionally NOT packed (BatchNorm cancels them)."""
    w_slab = np.zeros((plan["w_rows"], plan["w_cols"]), np.float32)
    v_slab = np.zeros((1, plan["v_cols"]), np.float32)
    latent, p_latent = plan["latent_dim"], plan["p_latent"]
    blocks, w_offs = plan["blocks"], plan["w_offs"]
    vec_widths, v_offs = plan["vec_widths"], plan["v_offs"]

    bi = 0
    for (w, _, _, _) in params["enc"]:
        din, dout = blocks[bi][0], blocks[bi][1]
        w_slab[:din, w_offs[bi]:w_offs[bi] + dout] = np.asarray(w)
        bi += 1
    din, off = blocks[bi][0], w_offs[bi]                       # fused head
    w_slab[:din, off:off + latent] = np.asarray(params["mu"][0])
    w_slab[:din, off + p_latent:off + p_latent + latent] = np.asarray(params["var"][0])
    bi += 1
    din, dout, off = blocks[bi][0], blocks[bi][1], w_offs[bi]  # decoder_in
    w_slab[:din, off:off + dout] = np.asarray(params["dec_in"][0])
    bi += 1
    for (w, _, _, _) in params["dec"]:
        din, dout = blocks[bi][0], blocks[bi][1]
        w_slab[:din, w_offs[bi]:w_offs[bi] + dout] = np.asarray(w)
        bi += 1

    vi = 0
    for (_, _, g, bt) in params["enc"]:
        wd = vec_widths[vi][0]
        v_slab[:, v_offs[vi]:v_offs[vi] + wd] = np.asarray(g); vi += 1
        wd = vec_widths[vi][0]
        v_slab[:, v_offs[vi]:v_offs[vi] + wd] = np.asarray(bt); vi += 1
    off = v_offs[vi]                                           # fused head bias
    v_slab[:, off:off + latent] = np.asarray(params["mu"][1])
    v_slab[:, off + p_latent:off + p_latent + latent] = np.asarray(params["var"][1])
    vi += 1
    wd = vec_widths[vi][0]                                     # decoder_in bias
    v_slab[:, v_offs[vi]:v_offs[vi] + wd] = np.asarray(params["dec_in"][1]); vi += 1
    for (_, _, g, bt) in params["dec"]:
        wd = vec_widths[vi][0]
        v_slab[:, v_offs[vi]:v_offs[vi] + wd] = np.asarray(g); vi += 1
        wd = vec_widths[vi][0]
        v_slab[:, v_offs[vi]:v_offs[vi] + wd] = np.asarray(bt); vi += 1

    return jnp.asarray(w_slab, dtype=jnp.bfloat16), jnp.asarray(v_slab, dtype=jnp.float32)


# ---------------------------------------------------------------------- pure-JAX reference

def reference_forward(x, eps, params, *, bf16_matmul=True):
    """Reference mirroring the PyTorch module (separate mu/var heads, biases on every Linear,
    centered-variance training-mode BatchNorm), applied independently to each MICRO_BATCH-row
    group (each group = one forward() call).  With bf16_matmul=True matmul operands are
    rounded to bf16 exactly like the kernel, isolating bugs from the mixed-precision choice."""
    def linear(h, w, b):
        if bf16_matmul:
            y = jnp.dot(h.astype(jnp.bfloat16), w.astype(jnp.bfloat16),
                        preferred_element_type=jnp.float32)
        else:
            y = jnp.dot(h, w, preferred_element_type=jnp.float32)
        return y + b

    def batchnorm(h, g, bt):
        mean = jnp.mean(h, axis=0, keepdims=True)
        var = jnp.mean((h - mean) ** 2, axis=0, keepdims=True)
        return (h - mean) / jnp.sqrt(var + BN_EPS) * g + bt

    def single(xb, eb):
        h = xb
        for (w, b, g, bt) in params["enc"]:
            h = jnp.maximum(batchnorm(linear(h, w, b), g, bt), 0.0)
        mu = linear(h, *params["mu"])
        logvar = linear(h, *params["var"])
        z = mu + eb * jnp.exp(0.5 * logvar)
        h = linear(z, *params["dec_in"])
        for (w, b, g, bt) in params["dec"]:
            h = batchnorm(linear(h, w, b), g, bt)
            h = jnp.where(h > 0, h, NEG_SLOPE * h)
        return h

    total = x.shape[0]
    ng = total // MICRO_BATCH
    out = jax.vmap(single)(x.reshape(ng, MICRO_BATCH, -1),
                           eps.reshape(ng, MICRO_BATCH, -1))
    return out.reshape(total, -1)


# ------------------------------------------------------------------------------------ main

if __name__ == "__main__":
    # Small shapes consistent with the module's forward: X is (batch, seq_length).
    SEQ_LENGTH = 128
    HIDDEN_LAYERS = 2
    HIDDEN_SIZE = 64
    LATENT_DIM = 32
    GROUPS_PER_STEP = 4       # G micro-batches per grid step -> M = 32 rows/step
                              # (production: G >= 32 -> M >= 256 to fill the v6e/v7x MXU)
    NUM_STEPS = 2
    TOTAL = NUM_STEPS * GROUPS_PER_STEP * MICRO_BATCH   # 64 rows = 8 independent calls

    key = jax.random.PRNGKey(0)
    kx, keps, kp = jax.random.split(key, 3)

    x = jax.random.normal(kx, (TOTAL, SEQ_LENGTH), jnp.float32)
    eps = jax.random.normal(keps, (TOTAL, LATENT_DIM), jnp.float32)   # reparam noise

    plan = make_plan(SEQ_LENGTH, HIDDEN_LAYERS, HIDDEN_SIZE, LATENT_DIM)
    params = init_params(kp, SEQ_LENGTH, HIDDEN_LAYERS, HIDDEN_SIZE, LATENT_DIM)
    w_slab, v_slab = pack_params(params, plan)

    out = vae_forward(x, eps, w_slab, v_slab, plan, groups_per_step=GROUPS_PER_STEP)
    out = jax.block_until_ready(out)

    assert out.shape == (TOTAL, SEQ_LENGTH) and out.dtype == jnp.float32
    assert bool(jnp.all(jnp.isfinite(out)))

    # Numerics-matched reference (same bf16 rounding of MXU operands).  Validates the
    # structural optimizations (bias drop, fused lane-aligned head, padded-width layers,
    # clamped E[x^2]-E[x]^2 BN, per-group segmented BN, slab packing, grid pipelining);
    # the only deviation from strict f32 PyTorch semantics is the bf16 matmul-operand cast.
    ref = reference_forward(x, eps, params, bf16_matmul=True)
    np.testing.assert_allclose(np.asarray(out), np.asarray(ref), rtol=2e-3, atol=2e-3)

    print("KERNEL_OK")
</pallas_src>

<mosaic_0001>
module attributes {stable_mosaic.version = 11 : i64} {
  func.func @kernel(%arg0: i32, %arg1: memref<32x128xbf16, #tpu.memory_space<vmem>>, %arg2: memref<32x128xf32, #tpu.memory_space<vmem>>, %arg3: memref<128x896xbf16, #tpu.memory_space<vmem>>, %arg4: memref<1x1408xf32, #tpu.memory_space<vmem>>, %arg5: memref<32x128xf32, #tpu.memory_space<vmem>>) attributes {dimension_semantics = [#tpu.dimension_semantics<parallel>], iteration_bounds = array<i64: 2>, scalar_prefetch = 0 : i64, scratch_operands = 0 : i64, tpu.core_type = #tpu.core_type<tc>, window_params = [{transform_indices = @transform_0, window_bounds = array<i64: 32, 128>}, {transform_indices = @transform_1, window_bounds = array<i64: 32, 128>}, {pipeline_mode = #tpu.pipeline_mode<synchronous>, transform_indices = @transform_2, window_bounds = array<i64: 128, 896>}, {pipeline_mode = #tpu.pipeline_mode<synchronous>, transform_indices = @transform_3, window_bounds = array<i64: 1, 1408>}, {transform_indices = @transform_4, window_bounds = array<i64: 32, 128>}]} {
    %c0 = arith.constant 0 : index
    %c0_0 = arith.constant 0 : index
    %0 = vector.load %arg1[%c0, %c0_0] : memref<32x128xbf16, #tpu.memory_space<vmem>>, vector<32x128xbf16>
    %c0_1 = arith.constant 0 : index
    %c0_2 = arith.constant 0 : index
    %1 = vector.load %arg3[%c0_1, %c0_2] : memref<128x896xbf16, #tpu.memory_space<vmem>>, vector<128x128xbf16>
    %cst = arith.constant dense<0.000000e+00> : vector<32x128xf32>
    %2 = tpu.matmul %0, %1, %cst {dimension_numbers = #tpu.dot_dimension_numbers<[1], [0], [0], [1], [0, 0, 1, 1], [], []>} : vector<32x128xbf16>, vector<128x128xbf16>, vector<32x128xf32> -> vector<32x128xf32>
    %c0_3 = arith.constant 0 : index
    %c0_4 = arith.constant 0 : index
    %3 = vector.load %arg4[%c0_3, %c0_4] : memref<1x1408xf32, #tpu.memory_space<vmem>>, vector<1x128xf32>
    %c0_5 = arith.constant 0 : index
    %c128 = arith.constant 128 : index
    %4 = vector.load %arg4[%c0_5, %c128] : memref<1x1408xf32, #tpu.memory_space<vmem>>, vector<1x128xf32>
    %5 = vector.shape_cast %2 : vector<32x128xf32> to vector<4x8x128xf32>
    %cst_6 = arith.constant dense<0.000000e+00> : vector<4x128xf32>
    %6 = vector.multi_reduction <add>, %5, %cst_6 [1] : vector<4x8x128xf32> to vector<4x128xf32>
    %7 = vector.shape_cast %6 : vector<4x128xf32> to vector<4x1x128xf32>
    %cst_7 = arith.constant 8.000000e+00 : f32
    %8 = vector.broadcast %cst_7 : f32 to vector<4x1x128xf32>
    %9 = arith.divf %7, %8 : vector<4x1x128xf32>
    %10 = arith.mulf %5, %5 : vector<4x8x128xf32>
    %cst_8 = arith.constant dense<0.000000e+00> : vector<4x128xf32>
    %11 = vector.multi_reduction <add>, %10, %cst_8 [1] : vector<4x8x128xf32> to vector<4x128xf32>
    %12 = vector.shape_cast %11 : vector<4x128xf32> to vector<4x1x128xf32>
    %cst_9 = arith.constant 8.000000e+00 : f32
    %13 = vector.broadcast %cst_9 : f32 to vector<4x1x128xf32>
    %14 = arith.divf %12, %13 : vector<4x1x128xf32>
    %15 = arith.mulf %9, %9 : vector<4x1x128xf32>
    %16 = arith.subf %14, %15 : vector<4x1x128xf32>
    %cst_10 = arith.constant 0.000000e+00 : f32
    %17 = vector.broadcast %cst_10 : f32 to vector<4x1x128xf32>
    %18 = arith.maximumf %16, %17 : vector<4x1x128xf32>
    %cst_11 = arith.constant 9.99999974E-6 : f32
    %19 = vector.broadcast %cst_11 : f32 to vector<4x1x128xf32>
    %20 = arith.addf %18, %19 : vector<4x1x128xf32>
    %21 = math.rsqrt %20 : vector<4x1x128xf32>
    %22 = vector.shape_cast %3 : vector<1x128xf32> to vector<1x1x128xf32>
    %23 = vector.broadcast %22 : vector<1x1x128xf32> to vector<4x1x128xf32>
    %24 = arith.mulf %21, %23 : vector<4x1x128xf32>
    %25 = vector.broadcast %9 : vector<4x1x128xf32> to vector<4x8x128xf32>
    %26 = arith.subf %5, %25 : vector<4x8x128xf32>
    %27 = vector.broadcast %24 : vector<4x1x128xf32> to vector<4x8x128xf32>
    %28 = arith.mulf %26, %27 : vector<4x8x128xf32>
    %29 = vector.shape_cast %4 : vector<1x128xf32> to vector<1x1x128xf32>
    %30 = vector.broadcast %29 : vector<1x1x128xf32> to vector<4x8x128xf32>
    %31 = arith.addf %28, %30 : vector<4x8x128xf32>
    %32 = vector.shape_cast %31 : vector<4x8x128xf32> to vector<32x128xf32>
    %cst_12 = arith.constant 0.000000e+00 : f32
    %33 = vector.broadcast %cst_12 : f32 to vector<32x128xf32>
    %34 = arith.maximumf %32, %33 : vector<32x128xf32>
    %35 = arith.truncf %34 : vector<32x128xf32> to vector<32x128xbf16>
    %c0_13 = arith.constant 0 : index
    %c128_14 = arith.constant 128 : index
    %36 = vector.load %arg3[%c0_13, %c128_14] : memref<128x896xbf16, #tpu.memory_space<vmem>>, vector<128x128xbf16>
    %cst_15 = arith.constant dense<0.000000e+00> : vector<32x128xf32>
    %37 = tpu.matmul %35, %36, %cst_15 {dimension_numbers = #tpu.dot_dimension_numbers<[1], [0], [0], [1], [0, 0, 1, 1], [], []>} : vector<32x128xbf16>, vector<128x128xbf16>, vector<32x128xf32> -> vector<32x128xf32>
    %c0_16 = arith.constant 0 : index
    %c256 = arith.constant 256 : index
    %38 = vector.load %arg4[%c0_16, %c256] : memref<1x1408xf32, #tpu.memory_space<vmem>>, vector<1x128xf32>
    %c0_17 = arith.constant 0 : index
    %c384 = arith.constant 384 : index
    %39 = vector.load %arg4[%c0_17, %c384] : memref<1x1408xf32, #tpu.memory_space<vmem>>, vector<1x128xf32>
    %40 = vector.shape_cast %37 : vector<32x128xf32> to vector<4x8x128xf32>
    %cst_18 = arith.constant dense<0.000000e+00> : vector<4x128xf32>
    %41 = vector.multi_reduction <add>, %40, %cst_18 [1] : vector<4x8x128xf32> to vector<4x128xf32>
    %42 = vector.shape_cast %41 : vector<4x128xf32> to vector<4x1x128xf32>
    %cst_19 = arith.constant 8.000000e+00 : f32
    %43 = vector.broadcast %cst_19 : f32 to vector<4x1x128xf32>
    %44 = arith.divf %42, %43 : vector<4x1x128xf32>
    %45 = arith.mulf %40, %40 : vector<4x8x128xf32>
    %cst_20 = arith.constant dense<0.000000e+00> : vector<4x128xf32>
    %46 = vector.multi_reduction <add>, %45, %cst_20 [1] : vector<4x8x128xf32> to vector<4x128xf32>
    %47 = vector.shape_cast %46 : vector<4x128xf32> to vector<4x1x128xf32>
    %cst_21 = arith.constant 8.000000e+00 : f32
    %48 = vector.broadcast %cst_21 : f32 to vector<4x1x128xf32>
    %49 = arith.divf %47, %48 : vector<4x1x128xf32>
    %50 = arith.mulf %44, %44 : vector<4x1x128xf32>
    %51 = arith.subf %49, %50 : vector<4x1x128xf32>
    %cst_22 = arith.constant 0.000000e+00 : f32
    %52 = vector.broadcast %cst_22 : f32 to vector<4x1x128xf32>
    %53 = arith.maximumf %51, %52 : vector<4x1x128xf32>
    %cst_23 = arith.constant 9.99999974E-6 : f32
    %54 = vector.broadcast %cst_23 : f32 to vector<4x1x128xf32>
    %55 = arith.addf %53, %54 : vector<4x1x128xf32>
    %56 = math.rsqrt %55 : vector<4x1x128xf32>
    %57 = vector.shape_cast %38 : vector<1x128xf32> to vector<1x1x128xf32>
    %58 = vector.broadcast %57 : vector<1x1x128xf32> to vector<4x1x128xf32>
    %59 = arith.mulf %56, %58 : vector<4x1x128xf32>
    %60 = vector.broadcast %44 : vector<4x1x128xf32> to vector<4x8x128xf32>
    %61 = arith.subf %40, %60 : vector<4x8x128xf32>
    %62 = vector.broadcast %59 : vector<4x1x128xf32> to vector<4x8x128xf32>
    %63 = arith.mulf %61, %62 : vector<4x8x128xf32>
    %64 = vector.shape_cast %39 : vector<1x128xf32> to vector<1x1x128xf32>
    %65 = vector.broadcast %64 : vector<1x1x128xf32> to vector<4x8x128xf32>
    %66 = arith.addf %63, %65 : vector<4x8x128xf32>
    %67 = vector.shape_cast %66 : vector<4x8x128xf32> to vector<32x128xf32>
    %cst_24 = arith.constant 0.000000e+00 : f32
    %68 = vector.broadcast %cst_24 : f32 to vector<32x128xf32>
    %69 = arith.maximumf %67, %68 : vector<32x128xf32>
    %70 = arith.truncf %69 : vector<32x128xf32> to vector<32x128xbf16>
    %c0_25 = arith.constant 0 : index
    %c256_26 = arith.constant 256 : index
    %71 = vector.load %arg3[%c0_25, %c256_26] : memref<128x896xbf16, #tpu.memory_space<vmem>>, vector<128x256xbf16>
    %cst_27 = arith.constant dense<0.000000e+00> : vector<32x256xf32>
    %72 = tpu.matmul %70, %71, %cst_27 {dimension_numbers = #tpu.dot_dimension_numbers<[1], [0], [0], [1], [0, 0, 1, 1], [], []>} : vector<32x128xbf16>, vector<128x256xbf16>, vector<32x256xf32> -> vector<32x256xf32>
    %c0_28 = arith.constant 0 : index
    %c512 = arith.constant 512 : index
    %73 = vector.load %arg4[%c0_28, %c512] : memref<1x1408xf32, #tpu.memory_space<vmem>>, vector<1x256xf32>
    %74 = vector.broadcast %73 : vector<1x256xf32> to vector<32x256xf32>
    %75 = arith.addf %72, %74 : vector<32x256xf32>
    %76 = vector.extract_strided_slice %75 {offsets = [0, 0], sizes = [32, 128], strides = [1, 1]} : vector<32x256xf32> to vector<32x128xf32>
    %77 = vector.extract_strided_slice %75 {offsets = [0, 128], sizes = [32, 128], strides = [1, 1]} : vector<32x256xf32> to vector<32x128xf32>
    %c0_29 = arith.constant 0 : index
    %c0_30 = arith.constant 0 : index
    %78 = vector.load %arg2[%c0_29, %c0_30] : memref<32x128xf32, #tpu.memory_space<vmem>>, vector<32x128xf32>
    %cst_31 = arith.constant 5.000000e-01 : f32
    %79 = vector.broadcast %cst_31 : f32 to vector<32x128xf32>
    %80 = arith.mulf %79, %77 : vector<32x128xf32>
    %81 = math.exp %80 : vector<32x128xf32>
    %82 = arith.mulf %78, %81 : vector<32x128xf32>
    %83 = arith.addf %76, %82 : vector<32x128xf32>
    %84 = arith.truncf %83 : vector<32x128xf32> to vector<32x128xbf16>
    %c0_32 = arith.constant 0 : index
    %c512_33 = arith.constant 512 : index
    %85 = vector.load %arg3[%c0_32, %c512_33] : memref<128x896xbf16, #tpu.memory_space<vmem>>, vector<128x128xbf16>
    %cst_34 = arith.constant dense<0.000000e+00> : vector<32x128xf32>
    %86 = tpu.matmul %84, %85, %cst_34 {dimension_numbers = #tpu.dot_dimension_numbers<[1], [0], [0], [1], [0, 0, 1, 1], [], []>} : vector<32x128xbf16>, vector<128x128xbf16>, vector<32x128xf32> -> vector<32x128xf32>
    %c0_35 = arith.constant 0 : index
    %c768 = arith.constant 768 : index
    %87 = vector.load %arg4[%c0_35, %c768] : memref<1x1408xf32, #tpu.memory_space<vmem>>, vector<1x128xf32>
    %88 = vector.broadcast %87 : vector<1x128xf32> to vector<32x128xf32>
    %89 = arith.addf %86, %88 : vector<32x128xf32>
    %90 = arith.truncf %89 : vector<32x128xf32> to vector<32x128xbf16>
    %c0_36 = arith.constant 0 : index
    %c640 = arith.constant 640 : index
    %91 = vector.load %arg3[%c0_36, %c640] : memref<128x896xbf16, #tpu.memory_space<vmem>>, vector<128x128xbf16>
    %cst_37 = arith.constant dense<0.000000e+00> : vector<32x128xf32>
    %92 = tpu.matmul %90, %91, %cst_37 {dimension_numbers = #tpu.dot_dimension_numbers<[1], [0], [0], [1], [0, 0, 1, 1], [], []>} : vector<32x128xbf16>, vector<128x128xbf16>, vector<32x128xf32> -> vector<32x128xf32>
    %c0_38 = arith.constant 0 : index
    %c896 = arith.constant 896 : index
    %93 = vector.load %arg4[%c0_38, %c896] : memref<1x1408xf32, #tpu.memory_space<vmem>>, vector<1x128xf32>
    %c0_39 = arith.constant 0 : index
    %c1024 = arith.constant 1024 : index
    %94 = vector.load %arg4[%c0_39, %c1024] : memref<1x1408xf32, #tpu.memory_space<vmem>>, vector<1x128xf32>
    %95 = vector.shape_cast %92 : vector<32x128xf32> to vector<4x8x128xf32>
    %cst_40 = arith.constant dense<0.000000e+00> : vector<4x128xf32>
    %96 = vector.multi_reduction <add>, %95, %cst_40 [1] : vector<4x8x128xf32> to vector<4x128xf32>
    %97 = vector.shape_cast %96 : vector<4x128xf32> to vector<4x1x128xf32>
    %cst_41 = arith.constant 8.000000e+00 : f32
    %98 = vector.broadcast %cst_41 : f32 to vector<4x1x128xf32>
    %99 = arith.divf %97, %98 : vector<4x1x128xf32>
    %100 = arith.mulf %95, %95 : vector<4x8x128xf32>
    %cst_42 = arith.constant dense<0.000000e+00> : vector<4x128xf32>
    %101 = vector.multi_reduction <add>, %100, %cst_42 [1] : vector<4x8x128xf32> to vector<4x128xf32>
    %102 = vector.shape_cast %101 : vector<4x128xf32> to vector<4x1x128xf32>
    %cst_43 = arith.constant 8.000000e+00 : f32
    %103 = vector.broadcast %cst_43 : f32 to vector<4x1x128xf32>
    %104 = arith.divf %102, %103 : vector<4x1x128xf32>
    %105 = arith.mulf %99, %99 : vector<4x1x128xf32>
    %106 = arith.subf %104, %105 : vector<4x1x128xf32>
    %cst_44 = arith.constant 0.000000e+00 : f32
    %107 = vector.broadcast %cst_44 : f32 to vector<4x1x128xf32>
    %108 = arith.maximumf %106, %107 : vector<4x1x128xf32>
    %cst_45 = arith.constant 9.99999974E-6 : f32
    %109 = vector.broadcast %cst_45 : f32 to vector<4x1x128xf32>
    %110 = arith.addf %108, %109 : vector<4x1x128xf32>
    %111 = math.rsqrt %110 : vector<4x1x128xf32>
    %112 = vector.shape_cast %93 : vector<1x128xf32> to vector<1x1x128xf32>
    %113 = vector.broadcast %112 : vector<1x1x128xf32> to vector<4x1x128xf32>
    %114 = arith.mulf %111, %113 : vector<4x1x128xf32>
    %115 = vector.broadcast %99 : vector<4x1x128xf32> to vector<4x8x128xf32>
    %116 = arith.subf %95, %115 : vector<4x8x128xf32>
    %117 = vector.broadcast %114 : vector<4x1x128xf32> to vector<4x8x128xf32>
    %118 = arith.mulf %116, %117 : vector<4x8x128xf32>
    %119 = vector.shape_cast %94 : vector<1x128xf32> to vector<1x1x128xf32>
    %120 = vector.broadcast %119 : vector<1x1x128xf32> to vector<4x8x128xf32>
    %121 = arith.addf %118, %120 : vector<4x8x128xf32>
    %122 = vector.shape_cast %121 : vector<4x8x128xf32> to vector<32x128xf32>
    %cst_46 = arith.constant 0.000000e+00 : f32
    %123 = vector.broadcast %cst_46 : f32 to vector<32x128xf32>
    %124 = arith.cmpf ogt, %122, %123 : vector<32x128xf32>
    %cst_47 = arith.constant 0.00999999977 : f32
    %125 = vector.broadcast %cst_47 : f32 to vector<32x128xf32>
    %126 = arith.mulf %125, %122 : vector<32x128xf32>
    %127 = arith.select %124, %122, %126 : vector<32x128xi1>, vector<32x128xf32>
    %128 = arith.truncf %127 : vector<32x128xf32> to vector<32x128xbf16>
    %c0_48 = arith.constant 0 : index
    %c768_49 = arith.constant 768 : index
    %129 = vector.load %arg3[%c0_48, %c768_49] : memref<128x896xbf16, #tpu.memory_space<vmem>>, vector<128x128xbf16>
    %cst_50 = arith.constant dense<0.000000e+00> : vector<32x128xf32>
    %130 = tpu.matmul %128, %129, %cst_50 {dimension_numbers = #tpu.dot_dimension_numbers<[1], [0], [0], [1], [0, 0, 1, 1], [], []>} : vector<32x128xbf16>, vector<128x128xbf16>, vector<32x128xf32> -> vector<32x128xf32>
    %c0_51 = arith.constant 0 : index
    %c1152 = arith.constant 1152 : index
    %131 = vector.load %arg4[%c0_51, %c1152] : memref<1x1408xf32, #tpu.memory_space<vmem>>, vector<1x128xf32>
    %c0_52 = arith.constant 0 : index
    %c1280 = arith.constant 1280 : index
    %132 = vector.load %arg4[%c0_52, %c1280] : memref<1x1408xf32, #tpu.memory_space<vmem>>, vector<1x128xf32>
    %133 = vector.shape_cast %130 : vector<32x128xf32> to vector<4x8x128xf32>
    %cst_53 = arith.constant dense<0.000000e+00> : vector<4x128xf32>
    %134 = vector.multi_reduction <add>, %133, %cst_53 [1] : vector<4x8x128xf32> to vector<4x128xf32>
    %135 = vector.shape_cast %134 : vector<4x128xf32> to vector<4x1x128xf32>
    %cst_54 = arith.constant 8.000000e+00 : f32
    %136 = vector.broadcast %cst_54 : f32 to vector<4x1x128xf32>
    %137 = arith.divf %135, %136 : vector<4x1x128xf32>
    %138 = arith.mulf %133, %133 : vector<4x8x128xf32>
    %cst_55 = arith.constant dense<0.000000e+00> : vector<4x128xf32>
    %139 = vector.multi_reduction <add>, %138, %cst_55 [1] : vector<4x8x128xf32> to vector<4x128xf32>
    %140 = vector.shape_cast %139 : vector<4x128xf32> to vector<4x1x128xf32>
    %cst_56 = arith.constant 8.000000e+00 : f32
    %141 = vector.broadcast %cst_56 : f32 to vector<4x1x128xf32>
    %142 = arith.divf %140, %141 : vector<4x1x128xf32>
    %143 = arith.mulf %137, %137 : vector<4x1x128xf32>
    %144 = arith.subf %142, %143 : vector<4x1x128xf32>
    %cst_57 = arith.constant 0.000000e+00 : f32
    %145 = vector.broadcast %cst_57 : f32 to vector<4x1x128xf32>
    %146 = arith.maximumf %144, %145 : vector<4x1x128xf32>
    %cst_58 = arith.constant 9.99999974E-6 : f32
    %147 = vector.broadcast %cst_58 : f32 to vector<4x1x128xf32>
    %148 = arith.addf %146, %147 : vector<4x1x128xf32>
    %149 = math.rsqrt %148 : vector<4x1x128xf32>
    %150 = vector.shape_cast %131 : vector<1x128xf32> to vector<1x1x128xf32>
    %151 = vector.broadcast %150 : vector<1x1x128xf32> to vector<4x1x128xf32>
    %152 = arith.mulf %149, %151 : vector<4x1x128xf32>
    %153 = vector.broadcast %137 : vector<4x1x128xf32> to vector<4x8x128xf32>
    %154 = arith.subf %133, %153 : vector<4x8x128xf32>
    %155 = vector.broadcast %152 : vector<4x1x128xf32> to vector<4x8x128xf32>
    %156 = arith.mulf %154, %155 : vector<4x8x128xf32>
    %157 = vector.shape_cast %132 : vector<1x128xf32> to vector<1x1x128xf32>
    %158 = vector.broadcast %157 : vector<1x1x128xf32> to vector<4x8x128xf32>
    %159 = arith.addf %156, %158 : vector<4x8x128xf32>
    %160 = vector.shape_cast %159 : vector<4x8x128xf32> to vector<32x128xf32>
    %cst_59 = arith.constant 0.000000e+00 : f32
    %161 = vector.broadcast %cst_59 : f32 to vector<32x128xf32>
    %162 = arith.cmpf ogt, %160, %161 : vector<32x128xf32>
    %cst_60 = arith.constant 0.00999999977 : f32
    %163 = vector.broadcast %cst_60 : f32 to vector<32x128xf32>
    %164 = arith.mulf %163, %160 : vector<32x128xf32>
    %165 = arith.select %162, %160, %164 : vector<32x128xi1>, vector<32x128xf32>
    %c0_61 = arith.constant 0 : index
    %c0_62 = arith.constant 0 : index
    %166 = vector.load %arg5[%c0_61, %c0_62] : memref<32x128xf32, #tpu.memory_space<vmem>>, vector<32x128xf32>
    tpu.vector_store %arg5[%c0_61, %c0_62], %165 {strides = array<i32>} : memref<32x128xf32, #tpu.memory_space<vmem>>, vector<32x128xf32>,
    return
  }
  func.func @transform_0(%arg0: i32) -> (i32, i32) {
    %c0_i32 = arith.constant 0 : i32
    %c0_i32_0 = arith.constant 0 : i32
    return %arg0, %c0_i32 : i32, i32
  }
  func.func @transform_1(%arg0: i32) -> (i32, i32) {
    %c0_i32 = arith.constant 0 : i32
    %c0_i32_0 = arith.constant 0 : i32
    return %arg0, %c0_i32 : i32, i32
  }
  func.func @transform_2(%arg0: i32) -> (i32, i32) {
    %c0_i32 = arith.constant 0 : i32
    %c0_i32_0 = arith.constant 0 : i32
    %c0_i32_1 = arith.constant 0 : i32
    return %c0_i32, %c0_i32_0 : i32, i32
  }
  func.func @transform_3(%arg0: i32) -> (i32, i32) {
    %c0_i32 = arith.constant 0 : i32
    %c0_i32_0 = arith.constant 0 : i32
    %c0_i32_1 = arith.constant 0 : i32
    return %c0_i32, %c0_i32_0 : i32, i32
  }
  func.func @transform_4(%arg0: i32) -> (i32, i32) {
    %c0_i32 = arith.constant 0 : i32
    %c0_i32_0 = arith.constant 0 : i32
    return %arg0, %c0_i32 : i32, i32
  }
}

</mosaic_0001>

<bundles_post_ra>
// kernel: tpu_custom_call.1
= control target key start
LH: loop header
LB: loop body
LE: loop exit
PB: predicated region body
PF: predicated region fallthrough
CT: control target
= control target key end

     0   :  { %s2771_s0 = inlined_call_operand.hbm [shape: bf16[64,128], index: 0, kind: input, shape index: {}]   ;;  %s2772_s1 = inlined_call_operand.hbm [shape: f32[64,128], index: 1, kind: input, shape index: {}]   ;;  %s2773_s2 = inlined_call_operand.hbm [shape: bf16[128,896], index: 2, kind: input, shape index: {}]   ;;  %s2774_s3 = inlined_call_operand.hbm [shape: f32[1,1408], index: 3, kind: input, shape index: {}]   ;;  %s2775_s4 = inlined_call_operand.hbm [shape: f32[64,128], index: 4, kind: output, shape index: {}]  }
   0x1   :  { %2779 = sst [smem:[#allocation16_spill]] %s2771_s0 }
   0x2   :  { %2780 = sst [smem:[#allocation17_spill]] %s2773_s2 }
   0x3   :  { %9 = vsyncpa [#allocation3], 0 }
   0x4   :  { %11 = vsyncpa [#allocation3 + $0x1], 0 }
   0x5   :  { %12 = vsyncpa [#allocation6], 0 }
   0x6   :  { %14 = vsyncpa [#allocation6 + $0x1], 0 }
   0x7   :  { %15 = vsyncpa [#allocation9], 0 }
   0x8   :  { %16 = vsyncpa [#allocation4], 0 }
   0x9   :  { %18 = vsyncpa [#allocation4 + $0x1], 0  ;;  %s2366_s15 = smov 0   ;;  %s2368_s16 = smov 0  }
   0xa   :  { %s2370_s17 = smov 0   ;;  %s2372_s18 = smov 0  }
   0xb LB: > { %s2387_s19 = sadd.s32 4294967295, %s2325_s18   ;;  %s1716_s20 = sadd.s32 4294967294, %s2325_s18   ;;  %s2325_s18 = sphi %s2372_s18, %s2801_s18   ;;  %s2321_s17 = sphi %s2370_s17, %s2800_s17   ;;  %s2317_s16 = sphi %s2368_s16, %s2799_s16   ;;  %s2313_s15 = sphi %s2366_s15, %s2798_s15  }
   0xc   : > { %p44_p0 = scmp.ne.s32.totalorder %s2317_s16, %s2313_s15  ;;  %p2776_p1 = scmp.eq.s32.totalorder %s2387_s19, 0 }
   0xd   : > { %p142_p3 = scmp.eq.s32.totalorder %s1716_s20, 1  ;;  %p1717_p5 = scmp.ge.s32.totalorder %s2325_s18, 1 }
   0xe   : > { %p2396_p4 = por %p2776_p1, %p44_p0  ;;  %p149_p7 = scmp.lt.s32.totalorder %s2325_s18, 3 }
   0xf   : > { %p2401_p6 = por %p142_p3, %p44_p0  ;;  %s2327_s24 = smov [#allocation7]  }
  0x10   : > { %s2781_s21 = scalar_select %p2396_p4, 1, 0 }
  0x11   : > { %s2782_s22 = scalar_select %p2401_p6, 1, 0 }
  0x12   : > { %p2406_p8 = pnand %p1717_p5, %p149_p7  ;;  %s161_s25 = sshll.u32 %s2327_s24, 4  ;;  %s162_s25 = int_to_ptr.vmem [resolvable:$true] %s161_s25 }
  0x13   : > { %s2328_s27 = smov [#allocation8]   ;;  %s2152_s29 = scalar_lea.vmem %s162_s25, 7168 }
  0x14   : > { %p1968_p9 = pneg %p2406_p8  ;;  %s175_s28 = sshll.u32 %s2328_s27, 4  ;;  %s176_s28 = int_to_ptr.vmem [resolvable:$true] %s175_s28 }
  0x15   : > { %p2153_p13 = scmp.ne.s32.totalorder %s162_s25, %s2152_s29  ;;  %p2160_p5 = scmp.lt.s32.totalorder %s162_s25, %s162_s25 }
  0x16   : > { %p2415_p11 = pnand %p1968_p9, %p2776_p1  ;;  %p2161_p7 = scmp.lt.s32.totalorder %s2152_s29, %s2152_s29 }
  0x18   : > { %p2143_p12 = pneg %p2415_p11  ;;  %p2162_p10 = por %p2161_p7, %p2160_p5 }
  0x1a   : > { %p2155_p0 = pnand %p2153_p13, %p2143_p12 }
  0x1c   : > { %p2156_p3 = pneg %p2155_p0 }
  0x1e   : > { %p2163_p9 = pnand %p2162_p10, %p2156_p3 }
  0x20   : > { %2166 = shalt.err (!%p2163_p9)
}
  0x21   : > { %s2329_s30 = smov 448   ;;  %s2330_s5 = smov 28  }
  0x22   : > { %s2785_s2 = sld [smem:[#allocation17_spill]]  ;;  %s2178_s8 = scalar_lea.vmem %s176_s28, 176 }
  0x23   : > { %p2179_p1 = scmp.ne.s32.totalorder %s176_s28, %s2178_s8  ;;  %s2185_s9 = scalar_lea.vmem %s176_s28, 192 }
  0x24   : > { %p2186_p2 = scmp.lt.s32.totalorder %s176_s28, %s176_s28  ;;  %p2187_p5 = scmp.lt.s32.totalorder %s2185_s9, %s2178_s8 }
  0x25   : > { %p2181_p13 = pnand %p2179_p1, %p2143_p12 }
  0x26   : > { %p2188_p10 = por %p2187_p5, %p2186_p2 }
  0x27   : > { %p2182_p0 = pneg %p2181_p13 }
  0x28   : > { %1971 = dma.hbm_to_vmem [thread:$0]  (!%p2415_p11), %s2785_s2, 7168, %s162_s25, [#allocation6], %s2329_s30, %s2329_s30, %s2330_s5  }
  0x29   : > { %p2189_p3 = pnand %p2188_p10, %p2182_p0 }
  0x2b   : > { %2192 = shalt.err (!%p2189_p3)
}
  0x2c   : > { %1974 = dma.hbm_to_vmem [thread:$0]  (!%p2415_p11), %s2774_s3, 176, %s176_s28, [#allocation9]  }
  0x2d   : > { %s2438_s12 = sadd.s32 1, %s2325_s18   ;;  %s31_s13 = sadd.s32 1, %s2321_s17 }
  0x2e   : > { %s28_s14 = ssub.s32 %s2325_s18, %s2438_s12  ;;  %p38_p1 = scmp.ne.s32.totalorder %s2321_s17, %s2317_s16 }
  0x2f   : > { %p29_p2 = scmp.eq.s32.totalorder %s28_s14, 0  ;;  %p39_p12 = scmp.eq.s32.totalorder %s2325_s18, 0 }
  0x30   : > { %p2786_p7 = scmp.eq.s32.totalorder %s2387_s19, 1  ;;  %p1988_p13 = scmp.lt.s32.totalorder %s2325_s18, 2 }
  0x31   : > { %s2454_s24 = scalar_select %p29_p2, %s2321_s17, %s31_s13  }
  0x32   : > { %p2448_p9 = por %p2786_p7, %p38_p1  ;;  %p40_p0 = por %p39_p12, %p38_p1 }
  0x33   : > { %s2457_s25 = sand.u32 1, %s2321_s17   ;;  %s1801_s27 = sshll.u32 %s2325_s18, 8 }
  0x34   : > { %s2787_s20 = scalar_select %p2448_p9, 1, 0 }
  0x35   : > { %s1721_s26 = sshll.u32 %s2457_s25, 4  ;;  %s2788_s0 = sld [smem:[#allocation16_spill]] }
  0x36   : > { %s190_s5 = scalar_lea.vmem [#allocation2], %s1721_s26  ;;  %p2468_p11 = pnand %p1988_p13, %p40_p0 }
  0x37   : > { %s197_s6 = sshll.u32 %s190_s5, 4  ;;  %s207_s8 = sand.u32 1, %s2325_s18   ;;  %s2466_s6 = int_to_ptr.vmem [resolvable:$true] %s197_s6 }
  0x38   : > { %s187_s9 = scalar_lea.sflag [#allocation3], %s2457_s25  ;;  %p2195_p10 = pneg %p2468_p11 }
  0x3b   : > { %s2464_s30 = scalar_lea.hbm %s2788_s0, %s1801_s27  ;;  %s2198_s14 = scalar_lea.hbm %s2788_s0, 512 }
  0x3c   : > { %s2193_s10 = scalar_lea.hbm %s2464_s30, 256  ;;  %p2199_p2 = scmp.lt.s32.totalorder %s2464_s30, %s2788_s0 }
  0x3d   : > { %p2194_p5 = scmp.ne.s32.totalorder %s2464_s30, %s2193_s10  ;;  %p2200_p12 = scmp.lt.s32.totalorder %s2198_s14, %s2193_s10 }
  0x3f   : > { %p2196_p3 = pnand %p2195_p10, %p2194_p5  ;;  %p2201_p7 = por %p2200_p12, %p2199_p2 }
  0x41   : > { %p2197_p1 = pneg %p2196_p3 }
  0x43   : > { %p2202_p13 = pnand %p2201_p7, %p2197_p1 }
  0x45   : > { %2205 = shalt.err (!%p2202_p13)
}
  0x46   : > { %s2206_s28 = scalar_lea.vmem %s2466_s6, 256  ;;  %s2331_s29 = smov [#allocation2]  }
  0x47   : > { %p2207_p0 = scmp.ne.s32.totalorder %s2466_s6, %s2206_s28  ;;  %s2211_s5 = sshll.u32 %s2331_s29, 4  ;;  %s2212_s5 = int_to_ptr.vmem [resolvable:$false] %s2211_s5 }
  0x48   : > { %s2213_s11 = scalar_lea.vmem %s2212_s5, 512  ;;  %p2214_p6 = scmp.lt.s32.totalorder %s2466_s6, %s2212_s5 }
  0x49   : > { %p2209_p5 = pnand %p2207_p0, %p2195_p10  ;;  %p2215_p9 = scmp.lt.s32.totalorder %s2213_s11, %s2206_s28 }
  0x4b   : > { %p2210_p3 = pneg %p2209_p5  ;;  %p2216_p4 = por %p2215_p9, %p2214_p6 }
  0x4d   : > { %p2217_p2 = pnand %p2216_p4, %p2210_p3 }
  0x4f   : > { %2220 = shalt.err (!%p2217_p2)
}
  0x50   : > { %s2332_s10 = smov 64   ;;  %s2333_s13 = smov 4  }
  0x51   : > { %1978 = dma.hbm_to_vmem [thread:$0]  (!%p2468_p11), %s2464_s30, 256, %s2466_s6, %s187_s9, %s2332_s10, %s2332_s10, %s2333_s13  }
  0x52   : > { %s1724_s14 = sshll.u32 %s2457_s25, 5  ;;  %s1802_s26 = sshll.u32 %s2325_s18, 9 }
  0x53   : > { %s2505_s29 = scalar_lea.hbm %s2772_s1, %s1802_s26  ;;  %s211_s5 = scalar_lea.vmem [#allocation5], %s1724_s14 }
  0x54   : > { %s218_s11 = sshll.u32 %s211_s5, 4  ;;  %s2511_s0 = scalar_lea.sflag [#allocation6], %s207_s8  ;;  %s2507_s11 = int_to_ptr.vmem [resolvable:$true] %s218_s11 }
  0x55   : > { %s2221_s2 = scalar_lea.hbm %s2505_s29, 512  ;;  %s2226_s6 = scalar_lea.hbm %s2772_s1, 1024 }
  0x56   : > { %p2222_p4 = scmp.ne.s32.totalorder %s2505_s29, %s2221_s2  ;;  %p2227_p1 = scmp.lt.s32.totalorder %s2505_s29, %s2772_s1 }
  0x57   : > { %p2228_p12 = scmp.lt.s32.totalorder %s2226_s6, %s2221_s2 }
  0x58   : > { %p2224_p6 = pnand %p2222_p4, %p2195_p10 }
  0x59   : > { %p2229_p7 = por %p2228_p12, %p2227_p1 }
  0x5a   : > { %p2225_p9 = pneg %p2224_p6 }
  0x5c   : > { %p2230_p13 = pnand %p2229_p7, %p2225_p9 }
  0x5e   : > { %2233 = shalt.err (!%p2230_p13)
}
  0x5f   : > { %s2234_s8 = scalar_lea.vmem %s2507_s11, 512  ;;  %s2334_s13 = smov [#allocation5]  }
  0x60   : > { %p2235_p0 = scmp.ne.s32.totalorder %s2507_s11, %s2234_s8  ;;  %s2239_s14 = sshll.u32 %s2334_s13, 4  ;;  %s2240_s14 = int_to_ptr.vmem [resolvable:$false] %s2239_s14 }
  0x61   : > { %s2241_s26 = scalar_lea.vmem %s2240_s14, 1024  ;;  %p2242_p2 = scmp.lt.s32.totalorder %s2507_s11, %s2240_s14 }
  0x62   : > { %p2237_p5 = pnand %p2235_p0, %p2195_p10  ;;  %p2243_p4 = scmp.lt.s32.totalorder %s2241_s26, %s2234_s8 }
  0x64   : > { %p2238_p3 = pneg %p2237_p5  ;;  %p2244_p6 = por %p2243_p4, %p2242_p2 }
  0x66   : > { %p2245_p1 = pnand %p2244_p6, %p2238_p3 }
  0x68   : > { %2248 = shalt.err (!%p2245_p1)
}
  0x69   : > { %s2335_s2 = smov 128   ;;  %s2336_s27 = smov 8  }
  0x6a   : > { %1981 = dma.hbm_to_vmem [thread:$0]  (!%p2468_p11), %s2505_s29, 512, %s2507_s11, %s2511_s0, %s2335_s2, %s2335_s2, %s2336_s27  }
  0x6b   : > { %230 = sbr.rel (%p2406_p8) target bundleno = 1600 (0x640), region = 36  ;;  %s2539_s28 = sand.u32 (!%p2406_p8), 1, %s2317_s16  }
  0x6c   : > { %s1728_s5 = sshll.u32 (!%p2406_p8), %s2539_s28, 4  ;;  %s233_s25 = scalar_lea.sflag (!%p2406_p8), [#allocation3], %s2539_s28 }
  0x6d   : > { %s2543_s30 = scalar_lea.vmem (!%p2406_p8), [#allocation2], %s1728_s5  ;;  %p2790_p10 = scmp.ne.s32.totalorder (!%p2406_p8), %s2781_s21, 0 }
  0x70   : > { %2292 = dma.done.wait (%p2790_p10), %s233_s25, 256  }
  0x71   : > { %2294 = vsyncadd (%p2790_p10), %s233_s25, 4294967040  ;;  %s241_s0 = sand.u32 1, %s2387_s19   ;;  %s1729_s23 = sshll.u32 %s2539_s28, 5 }
  0x72   : > { %s242_s7 = scalar_lea.sflag [#allocation6], %s241_s0  ;;  %s2553_s29 = scalar_lea.vmem [#allocation5], %s1729_s23 }
  0x73   : > { %2296 = dma.done.wait (%p2790_p10), %s242_s7, 512  }
  0x74   : > { %2298 = vsyncadd (%p2790_p10), %s242_s7, 4294966784  ;;  %p2791_p8 = scmp.eq.s32.totalorder %s2387_s19, 0 }
  0x76   : > { %2300 = dma.done.wait (%p2791_p8), [#allocation6], 7168   ;;  %p2792_p11 = pmov %p2791_p8 }
  0x77   : > { %p2793_p9 = pmov %p2791_p8 }
  0x78   : > { %2302 = vsyncadd (%p2792_p11), [#allocation6], 4294960128 }
  0x79   : > { %2304 = dma.done.wait (%p2793_p9), [#allocation9], 176   ;;  %p2794_p12 = pmov %p2791_p8 }
  0x7a   : > { %v2035_v0 = vld [vmem:[#allocation7 + $0x188] ss:$28 sps:$4 sm:$0xff]   ;;  %v2036_v1 = vld [vmem:[#allocation7 + $0x150] ss:$28 sps:$4 sm:$0xff]   ;;  %v2037_v2 = vld [vmem:[#allocation7 + $0x118] ss:$28 sps:$4 sm:$0xff]  }
  0x7b   : > { %2306 = vsyncadd (%p2794_p12), [#allocation9], 4294967120  ;;  %1854 = vmatprep.subr.bf16.mxu0 %v2035_v0  ;;  %v2038_v3 = vld [vmem:[#allocation7 + $0xe0] ss:$28 sps:$4 sm:$0xff]   ;;  %v2039_v5 = vld [vmem:[#allocation7 + $0xa8] ss:$28 sps:$4 sm:$0xff]  }
  0x7c   : > { %1855 = vmatpush3.bf16.msra.mxu0 %v2035_v0  ;;  %v2043_v4 = vld [vmem:[%s2543_s30] sm:$0xff]   ;;  %v2044_v9 = vld [vmem:[%s2543_s30 + $0x8] sm:$0xff]   ;;  %s282_s21 = scalar_lea.vmem [#allocation10], %s1729_s23  ;;  %s1803_s11 = sshll.u32 %s2387_s19, 9 }
  0x7d   : > { %1856 = vmatprep.subr.bf16.mxu0 %v2036_v1  ;;  %1870 = vmatprep.mubr.bf16.mxu0 %v2043_v4  ;;  %v2040_v6 = vld [vmem:[#allocation7 + $0x70] ss:$28 sps:$4 sm:$0xff]   ;;  %v2041_v7 = vld [vmem:[#allocation7 + $0x38] ss:$28 sps:$4 sm:$0xff]   ;;  %v2042_v8 = vld [vmem:[#allocation7] ss:$28 sps:$4 sm:$0xff]   ;;  %s2726_s8 = scalar_lea.hbm %s2775_s4, %s1803_s11 }
  0x7e   : > { %v2045_v10 = vld [vmem:[#allocation7 + $0x18c] ss:$28 sps:$4 sm:$0xff]   ;;  %v2046_v11 = vld [vmem:[#allocation7 + $0x154] ss:$28 sps:$4 sm:$0xff]   ;;  %v2047_v12 = vld [vmem:[#allocation7 + $0x11c] ss:$28 sps:$4 sm:$0xff]  }
  0x7f   : > { %1874 = vmatprep.subr.bf16.mxu1 %v2045_v10  ;;  %v2048_v13 = vld [vmem:[#allocation7 + $0xe4] ss:$28 sps:$4 sm:$0xff]   ;;  %v2049_v14 = vld [vmem:[#allocation7 + $0xac] ss:$28 sps:$4 sm:$0xff]   ;;  %v2050_v15 = vld [vmem:[#allocation7 + $0x74] ss:$28 sps:$4 sm:$0xff]  }
  0x80   : > { %1857 = vmatpush3.bf16.msra.mxu0 %v2036_v1  ;;  %1875 = vmatpush3.bf16.msra.mxu1 %v2045_v10  ;;  %v2051_v16 = vld [vmem:[#allocation7 + $0x3c] ss:$28 sps:$4 sm:$0xff]   ;;  %v2052_v17 = vld [vmem:[#allocation7 + $0x4] ss:$28 sps:$4 sm:$0xff]   ;;  %s1601_s6 = sshll.u32 %s282_s21, 4  ;;  %s1588_s19 = scalar_lea.sflag [#allocation4], %s2539_s28  ;;  %s2728_s6 = int_to_ptr.vmem [resolvable:$true] %s1601_s6 }
  0x81   : > { %1858 = vmatprep.subr.bf16.mxu0 %v2037_v2  ;;  %1876 = vmatprep.subr.bf16.mxu1 %v2046_v11  ;;  %s2249_s13 = scalar_lea.vmem %s2728_s6, 512  ;;  %p2795_p13 = scmp.ne.s32.totalorder %s2787_s20, 0 }
  0x82   : > { %p2250_p7 = scmp.ne.s32.totalorder %s2728_s6, %s2249_s13  ;;  %s2338_s14 = smov [#allocation10]  }
  0x83   : > { %s2253_s26 = sshll.u32 %s2338_s14, 4  ;;  %s2254_s26 = int_to_ptr.vmem [resolvable:$false] %s2253_s26 }
  0x84   : > { %1859 = vmatpush3.bf16.msra.mxu0 %v2037_v2  ;;  %1877 = vmatpush3.bf16.msra.mxu1 %v2046_v11  ;;  %p2251_p0 = pnand %p2250_p7, %p2795_p13  ;;  %s2255_s2 = scalar_lea.vmem %s2254_s26, 1024 }
  0x85   : > { %1860 = vmatprep.subr.bf16.mxu0 %v2038_v3  ;;  %1878 = vmatprep.subr.bf16.mxu1 %v2047_v12  ;;  %p2256_p3 = scmp.lt.s32.totalorder %s2728_s6, %s2254_s26  ;;  %p2257_p2 = scmp.lt.s32.totalorder %s2255_s2, %s2249_s13 }
  0x86   : > { %p2252_p5 = pneg %p2251_p0 }
  0x87   : > { %p2258_p4 = por %p2257_p2, %p2256_p3 }
  0x88   : > { %1861 = vmatpush3.bf16.msra.mxu0 %v2038_v3  ;;  %1879 = vmatpush3.bf16.msra.mxu1 %v2047_v12 }
  0x89   : > { %1862 = vmatprep.subr.bf16.mxu0 %v2039_v5  ;;  %1880 = vmatprep.subr.bf16.mxu1 %v2048_v13  ;;  %p2259_p6 = pnand %p2258_p4, %p2252_p5 }
  0x8c   : > { %1863 = vmatpush3.bf16.msra.mxu0 %v2039_v5  ;;  %1881 = vmatpush3.bf16.msra.mxu1 %v2048_v13 }
  0x8d   : > { %1864 = vmatprep.subr.bf16.mxu0 %v2040_v6  ;;  %1882 = vmatprep.subr.bf16.mxu1 %v2049_v14 }
  0x90   : > { %1865 = vmatpush3.bf16.msra.mxu0 %v2040_v6  ;;  %1883 = vmatpush3.bf16.msra.mxu1 %v2049_v14 }
  0x91   : > { %1866 = vmatprep.subr.bf16.mxu0 %v2041_v7  ;;  %1884 = vmatprep.subr.bf16.mxu1 %v2050_v15 }
  0x94   : > { %1867 = vmatpush3.bf16.msra.mxu0 %v2041_v7  ;;  %1885 = vmatpush3.bf16.msra.mxu1 %v2050_v15 }
  0x95   : > { %1868 = vmatprep.subr.bf16.mxu0 %v2042_v8  ;;  %1886 = vmatprep.subr.bf16.mxu1 %v2051_v16 }
  0x98   : > { %1869 = vmatpush3.bf16.msra.mxu0 %v2042_v8  ;;  %1887 = vmatpush3.bf16.msra.mxu1 %v2051_v16 }
  0x99   : > { %1888 = vmatprep.subr.bf16.mxu1 %v2052_v17 }
  0x9b   : > { %1871 = vmatmul.mubr.bf16.vlgmr.msra.gmra.mxu0 %v2044_v9 }
  0x9c   : > { %1889 = vmatpush3.bf16.msra.mxu1 %v2052_v17 }
 0x15b   : > { %v2569_v18 = vpop.f32.mrf.mxu0 }
 0x15c   : > { %v430_v19 = vrot.slane %v2569_v18, 4  ;;  %v449_v20 = vmul.f32 %v2569_v18, %v2569_v18 }
 0x15d   : > { %v2574_v21 = vpop.f32.mrf.mxu0 }
 0x15e   : > { %v431_v22 = vadd.f32 %v2569_v18, %v430_v19  ;;  %v463_v23 = vrot.slane %v449_v20, 4  ;;  %v418_v24 = vrot.slane %v2574_v21, 4  ;;  %v447_v25 = vmul.f32 %v2574_v21, %v2574_v21 }
 0x15f   : > { %v2580_v26 = vpop.f32.mrf.mxu0 }
 0x160   : > { %v432_v27 = vrot.slane %v431_v22, 2  ;;  %v464_v28 = vadd.f32 %v463_v23, %v449_v20  ;;  %v419_v29 = vadd.f32 %v418_v24, %v2574_v21  ;;  %v451_v30 = vrot.slane %v447_v25, 4 }
 0x161   : > { %v436_v31 = vrot.slane %v2580_v26, 4  ;;  %v450_v32 = vmul.f32 %v2580_v26, %v2580_v26  ;;  %v2586_v33 = vpop.f32.mrf.mxu0 }
 0x162   : > { %v433_v34 = vadd.f32 %v432_v27, %v431_v22  ;;  %v465_v35 = vrot.slane %v464_v28, 2  ;;  %v420_v36 = vrot.slane %v419_v29, 2  ;;  %v452_v37 = vadd.f32 %v451_v30, %v447_v25 }
 0x163   : > { %v437_v38 = vadd.f32 %v2580_v26, %v436_v31  ;;  %v469_v39 = vrot.slane %v450_v32, 4  ;;  %v424_v40 = vrot.slane %v2586_v33, 4  ;;  %v448_v41 = vmul.f32 %v2586_v33, %v2586_v33 }
 0x164   : > { %v434_v42 = vrot.slane %v433_v34, 1  ;;  %v466_v43 = vadd.f32 %v465_v35, %v464_v28  ;;  %v421_v44 = vadd.f32 %v420_v36, %v419_v29  ;;  %v453_v45 = vrot.slane %v452_v37, 2 }
 0x165   : > { %v438_v46 = vrot.slane %v437_v38, 2  ;;  %v470_v47 = vadd.f32 %v469_v39, %v450_v32  ;;  %v425_v48 = vadd.f32 %v424_v40, %v2586_v33  ;;  %v457_v49 = vrot.slane %v448_v41, 4  ;;  %v416_v40 = vld [vmem:[#allocation8] sm:$0x1] }
 0x166   : > { %v435_v50 = vadd.f32 %v434_v42, %v433_v34  ;;  %v467_v51 = vrot.slane %v466_v43, 1  ;;  %v422_v52 = vrot.slane %v421_v44, 1  ;;  %v454_v53 = vadd.f32 %v453_v45, %v452_v37 }
 0x167   : > { %v439_v54 = vadd.f32 %v438_v46, %v437_v38  ;;  %v471_v55 = vrot.slane %v470_v47, 2  ;;  %v426_v56 = vrot.slane %v425_v48, 2  ;;  %v458_v57 = vadd.f32 %v457_v49, %v448_v41 }
 0x168   : > { %v2593_v58 = vmul.f32 0.125, %v435_v50  ;;  %v468_v59 = vadd.f32 %v467_v51, %v466_v43  ;;  %v423_v60 = vadd.f32 %v422_v52, %v421_v44  ;;  %v455_v61 = vrot.slane %v454_v53, 1 }
 0x169   : > { %v440_v62 = vrot.slane %v439_v54, 1  ;;  %v472_v63 = vadd.f32 %v471_v55, %v470_v47  ;;  %v427_v0 = vadd.f32 %v426_v56, %v425_v48  ;;  %v459_v1 = vrot.slane %v458_v57, 2 }
 0x16a   : > { %v477_v2 = vmul.f32 0.125, %v468_v59  ;;  %v481_v3 = vmul.f32 %v2593_v58, %v2593_v58  ;;  %v443_v4 = vmul.f32 0.125, %v423_v60  ;;  %v456_v5 = vadd.f32 %v455_v61, %v454_v53  ;;  %v1743_v61 = vld [vmem:[#allocation8 + $0x1] ss:$0 sm:$0xff] }
 0x16b   : > { %v441_v6 = vadd.f32 %v440_v62, %v439_v54  ;;  %v473_v7 = vrot.slane %v472_v63, 1  ;;  %v428_v8 = vrot.slane %v427_v0, 1  ;;  %v460_v11 = vadd.f32 %v459_v1, %v458_v57 }
 0x16c   : > { %v485_v9 = vsub.f32 %v477_v2, %v481_v3  ;;  %v479_v10 = vmul.f32 %v443_v4, %v443_v4  ;;  %v475_v12 = vmul.f32 0.125, %v456_v5  ;;  %v507_v38 = vlaneseq }
 0x16d   : > { %v446_v13 = vmul.f32 0.125, %v441_v6  ;;  %v474_v14 = vadd.f32 %v473_v7, %v472_v63  ;;  %v429_v15 = vadd.f32 %v428_v8, %v427_v0  ;;  %v461_v17 = vrot.slane %v460_v11, 1  ;;  %v2055_v6 = vld [vmem:[#allocation7 + $0x194] ss:$28 sps:$4 sm:$0xff]  }
 0x16e   : > { %v489_v16 = vmax.f32 %v485_v9, 0.0  ;;  %v483_v19 = vsub.f32 %v475_v12, %v479_v10  ;;  %v2597_v39 = vshrl.u32 %v507_v38, 7  ;;  %v503_v50 = vsub.f32 %v2574_v21, %v443_v4  ;;  %v2053_v7 = vld [vmem:[#allocation7 + $0x190] ss:$28 sps:$4 sm:$0xff]   ;;  %890 = vmatprep.subr.bf16.mxu0 %v2055_v6  ;;  %v2056_v8 = vld [vmem:[#allocation7 + $0x158] ss:$28 sps:$4 sm:$0xff]  }
 0x16f   : > { %v478_v20 = vmul.f32 0.125, %v474_v14  ;;  %v482_v22 = vmul.f32 %v446_v13, %v446_v13  ;;  %v444_v24 = vmul.f32 0.125, %v429_v15  ;;  %v462_v25 = vadd.f32 %v461_v17, %v460_v11  ;;  %891 = vmatpush1.bf16.msra.mxu0 %v2053_v7  ;;  %v2061_v9 = vld [vmem:[#allocation7 + $0x124] ss:$28 sps:$4 sm:$0xff]   ;;  %v2064_v11 = vld [vmem:[#allocation7 + $0xec] ss:$28 sps:$4 sm:$0xff]  }
 0x170   : > { %v493_v23 = vadd.f32 1e-05, %v489_v16  ;;  %v487_v27 = vmax.f32 %v483_v19, 0.0  ;;  %v2600_v43 = vsub.s32 0, %v2597_v39  ;;  %v505_v52 = vsub.f32 %v2569_v18, %v2593_v58  ;;  %v2059_v10 = vld [vmem:[#allocation7 + $0x120] ss:$28 sps:$4 sm:$0xff]  }
 0x171   : > { %v486_v28 = vsub.f32 %v478_v20, %v482_v22  ;;  %v476_v29 = vmul.f32 0.125, %v462_v25  ;;  %v480_v30 = vmul.f32 %v444_v24, %v444_v24  ;;  %v506_v53 = vsub.f32 %v2580_v26, %v446_v13  ;;  %v2062_v12 = vld [vmem:[#allocation7 + $0xe8] ss:$28 sps:$4 sm:$0xff]   ;;  %v2067_v13 = vld [vmem:[#allocation7 + $0xb4] ss:$28 sps:$4 sm:$0xff]  }
 0x172   : > { %2101 = vrsqrt.f32 %v493_v23  ;;  %v491_v31 = vadd.f32 1e-05, %v487_v27  ;;  %v504_v60 = vsub.f32 %v2586_v33, %v444_v24  ;;  %v2058_v33 = vld [vmem:[#allocation7 + $0x15c] ss:$28 sps:$4 sm:$0xff]   ;;  %v2065_v14 = vld [vmem:[#allocation7 + $0xb0] ss:$28 sps:$4 sm:$0xff]  }
 0x173   : > { %v490_v32 = vmax.f32 %v486_v28, 0.0  ;;  %v484_v34 = vsub.f32 %v476_v29, %v480_v30  ;;  %892 = vmatprep.subr.bf16.mxu0 %v2058_v33  ;;  %v2070_v15 = vld [vmem:[#allocation7 + $0x7c] ss:$28 sps:$4 sm:$0xff]   ;;  %v2073_v17 = vld [vmem:[#allocation7 + $0x44] ss:$28 sps:$4 sm:$0xff]   ;;  %v2337_v23 = vmov 0  }
 0x174   : > { %2103 = vrsqrt.f32 %v491_v31  ;;  %893 = vmatpush1.bf16.msra.mxu0 %v2056_v8  ;;  %v2068_v16 = vld [vmem:[#allocation7 + $0x78] ss:$28 sps:$4 sm:$0xff]   ;;  %v2071_v19 = vld [vmem:[#allocation7 + $0x40] ss:$28 sps:$4 sm:$0xff]   ;;  %v2074_v20 = vld [vmem:[#allocation7 + $0x8] ss:$28 sps:$4 sm:$0xff]   ;;  %922 = vmatprep.mubr.bf16.mxu0 %v2337_v23 }
 0x175   : > { %v494_v35 = vadd.f32 1e-05, %v490_v32  ;;  %v488_v36 = vmax.f32 %v484_v34, 0.0  ;;  %894 = vmatprep.subr.bf16.mxu0 %v2061_v9  ;;  %v2076_v22 = vld [vmem:[#allocation7 + $0xc] ss:$28 sps:$4 sm:$0xff]  }
 0x177   : > { %2105 = vrsqrt.f32 %v494_v35  ;;  %v492_v37 = vadd.f32 1e-05, %v488_v36 }
 0x178   : > { %895 = vmatpush1.bf16.msra.mxu0 %v2059_v10 }
 0x179   : > { %2107 = vrsqrt.f32 %v492_v37  ;;  %896 = vmatprep.subr.bf16.mxu0 %v2064_v11 }
 0x17c   : > { %897 = vmatpush1.bf16.msra.mxu0 %v2062_v12 }
 0x17d   : > { %898 = vmatprep.subr.bf16.mxu0 %v2067_v13 }
 0x17f   : > { %v2102_v41 = vpop.eup %2101 }
 0x180   : > { %v501_v42 = vmul.f32 %v2102_v41, %v416_v40  ;;  %899 = vmatpush1.bf16.msra.mxu0 %v2065_v14 }
 0x181   : > { %v2104_v44 = vpop.eup %2103  ;;  %900 = vmatprep.subr.bf16.mxu0 %v2070_v15 }
 0x182   : > { %v499_v45 = vmul.f32 %v2104_v44, %v416_v40  ;;  %v518_v47 = vrot.slane %v501_v42, %v2600_v43 }
 0x184   : > { %v2106_v46 = vpop.eup %2105  ;;  %v510_v49 = vrot.slane %v499_v45, %v2600_v43  ;;  %v525_v57 = vmul.f32 %v518_v47, %v505_v52  ;;  %901 = vmatpush1.bf16.msra.mxu0 %v2068_v16 }
 0x185   : > { %v502_v48 = vmul.f32 %v2106_v46, %v416_v40  ;;  %902 = vmatprep.subr.bf16.mxu0 %v2073_v17 }
 0x186   : > { %v2108_v51 = vpop.eup %2107  ;;  %v523_v56 = vmul.f32 %v510_v49, %v503_v50  ;;  %v535_v1 = vadd.f32 %v1743_v61, %v525_v57 }
 0x187   : > { %v522_v54 = vrot.slane %v502_v48, %v2600_v43  ;;  %v500_v55 = vmul.f32 %v2108_v51, %v416_v40 }
 0x188   : > { %v533_v21 = vadd.f32 %v1743_v61, %v523_v56  ;;  %v539_v26 = vmax.f32 %v535_v1, 0.0  ;;  %903 = vmatpush1.bf16.msra.mxu0 %v2071_v19 }
 0x189   : > { %v526_v59 = vmul.f32 %v522_v54, %v506_v53  ;;  %v514_v62 = vrot.slane %v500_v55, %v2600_v43  ;;  %904 = vmatprep.subr.bf16.mxu0 %v2076_v22 }
 0x18a   : > { %v537_v18 = vmax.f32 %v533_v21, 0.0 }
 0x18b   : > { %v536_v63 = vadd.f32 %v1743_v61, %v526_v59  ;;  %v524_v0 = vmul.f32 %v514_v62, %v504_v60 }
 0x18c   : > { %905 = vmatpush1.bf16.msra.mxu0 %v2074_v20 }
 0x18d   : > { %v534_v2 = vadd.f32 %v1743_v61, %v524_v0  ;;  %v540_v3 = vmax.f32 %v536_v63, 0.0 }
 0x18f   : > { %v538_v58 = vmax.f32 %v534_v2, 0.0  ;;  %v542_v5 = vpack.c.bf16 %v540_v3, %v539_v26 }
 0x191   : > { %v541_v4 = vpack.c.bf16 %v538_v58, %v537_v18 }
 0x193   : > { %1890 = vmatprep.mubr.bf16.mxu1 %v541_v4 }
 0x194   : > { %1891 = vmatmul.mubr.bf16.vlgmr.msra.gmra.mxu1 %v542_v5 }
 0x254   : > { %v2612_v24 = vpop.f32.mrf.mxu1 }
 0x255   : > { %v670_v25 = vrot.slane %v2612_v24, 4  ;;  %v688_v27 = vmul.f32 %v2612_v24, %v2612_v24 }
 0x256   : > { %v2617_v28 = vpop.f32.mrf.mxu1 }
 0x257   : > { %v671_v29 = vadd.f32 %v2612_v24, %v670_v25  ;;  %v702_v30 = vrot.slane %v688_v27, 4  ;;  %v658_v31 = vrot.slane %v2617_v28, 4  ;;  %v686_v32 = vmul.f32 %v2617_v28, %v2617_v28 }
 0x258   : > { %v2623_v34 = vpop.f32.mrf.mxu1 }
 0x259   : > { %v672_v35 = vrot.slane %v671_v29, 2  ;;  %v703_v36 = vadd.f32 %v702_v30, %v688_v27  ;;  %v659_v37 = vadd.f32 %v658_v31, %v2617_v28  ;;  %v690_v38 = vrot.slane %v686_v32, 4 }
 0x25a   : > { %v676_v40 = vrot.slane %v2623_v34, 4  ;;  %v689_v41 = vmul.f32 %v2623_v34, %v2623_v34  ;;  %v2629_v42 = vpop.f32.mrf.mxu1 }
 0x25b   : > { %v673_v44 = vadd.f32 %v672_v35, %v671_v29  ;;  %v704_v45 = vrot.slane %v703_v36, 2  ;;  %v660_v46 = vrot.slane %v659_v37, 2  ;;  %v691_v47 = vadd.f32 %v690_v38, %v686_v32 }
 0x25c   : > { %v677_v48 = vadd.f32 %v2623_v34, %v676_v40  ;;  %v708_v49 = vrot.slane %v689_v41, 4  ;;  %v664_v50 = vrot.slane %v2629_v42, 4  ;;  %v687_v51 = vmul.f32 %v2629_v42, %v2629_v42 }
 0x25d   : > { %v674_v52 = vrot.slane %v673_v44, 1  ;;  %v705_v53 = vadd.f32 %v704_v45, %v703_v36  ;;  %v661_v54 = vadd.f32 %v660_v46, %v659_v37  ;;  %v692_v55 = vrot.slane %v691_v47, 2 }
 0x25e   : > { %v678_v56 = vrot.slane %v677_v48, 2  ;;  %v709_v57 = vadd.f32 %v708_v49, %v689_v41  ;;  %v665_v59 = vadd.f32 %v664_v50, %v2629_v42  ;;  %v696_v60 = vrot.slane %v687_v51, 4 }
 0x25f   : > { %v675_v61 = vadd.f32 %v674_v52, %v673_v44  ;;  %v706_v62 = vrot.slane %v705_v53, 1  ;;  %v662_v63 = vrot.slane %v661_v54, 1  ;;  %v693_v0 = vadd.f32 %v692_v55, %v691_v47  ;;  %v656_v52 = vld [vmem:[#allocation8 + $0x2] sm:$0x1] }
 0x260   : > { %v679_v21 = vadd.f32 %v678_v56, %v677_v48  ;;  %v710_v1 = vrot.slane %v709_v57, 2  ;;  %v666_v2 = vrot.slane %v665_v59, 2  ;;  %v697_v3 = vadd.f32 %v696_v60, %v687_v51 }
 0x261   : > { %v2636_v18 = vmul.f32 0.125, %v675_v61  ;;  %v707_v58 = vadd.f32 %v706_v62, %v705_v53  ;;  %v663_v26 = vadd.f32 %v662_v63, %v661_v54  ;;  %v694_v4 = vrot.slane %v693_v0, 1 }
 0x262   : > { %v680_v5 = vrot.slane %v679_v21, 1  ;;  %v711_v6 = vadd.f32 %v710_v1, %v709_v57  ;;  %v667_v7 = vadd.f32 %v666_v2, %v665_v59  ;;  %v698_v33 = vrot.slane %v697_v3, 2  ;;  %v1752_v2 = vld [vmem:[#allocation8 + $0x3] ss:$0 sm:$0xff] }
 0x263   : > { %v716_v8 = vmul.f32 0.125, %v707_v58  ;;  %v720_v9 = vmul.f32 %v2636_v18, %v2636_v18  ;;  %v682_v10 = vmul.f32 0.125, %v663_v26  ;;  %v695_v11 = vadd.f32 %v694_v4, %v693_v0 }
 0x264   : > { %v681_v12 = vadd.f32 %v680_v5, %v679_v21  ;;  %v712_v13 = vrot.slane %v711_v6, 1  ;;  %v668_v14 = vrot.slane %v667_v7, 1  ;;  %v699_v17 = vadd.f32 %v698_v33, %v697_v3 }
 0x265   : > { %v724_v15 = vsub.f32 %v716_v8, %v720_v9  ;;  %v718_v16 = vmul.f32 %v682_v10, %v682_v10  ;;  %v714_v19 = vmul.f32 0.125, %v695_v11  ;;  %v742_v57 = vsub.f32 %v2617_v28, %v682_v10 }
 0x266   : > { %v685_v20 = vmul.f32 0.125, %v681_v12  ;;  %v713_v22 = vadd.f32 %v712_v13, %v711_v6  ;;  %v669_v25 = vadd.f32 %v668_v14, %v667_v7  ;;  %v700_v27 = vrot.slane %v699_v17, 1  ;;  %v2078_v14 = vld [vmem:[#allocation7 + $0x160] ss:$28 sps:$4 sm:$0xff]  }
 0x267   : > { %v722_v29 = vsub.f32 %v714_v19, %v718_v16  ;;  %v728_v32 = vmax.f32 %v724_v15, 0.0  ;;  %v744_v28 = vsub.f32 %v2612_v24, %v2636_v18  ;;  %v2079_v24 = vld [vmem:[#allocation7 + $0x128] ss:$28 sps:$4 sm:$0xff]   ;;  %v2080_v18 = vld [vmem:[#allocation7 + $0xf0] ss:$28 sps:$4 sm:$0xff]  }
 0x268   : > { %v717_v30 = vmul.f32 0.125, %v713_v22  ;;  %v721_v31 = vmul.f32 %v685_v20, %v685_v20  ;;  %v683_v35 = vmul.f32 0.125, %v669_v25  ;;  %v701_v36 = vadd.f32 %v700_v27, %v699_v17  ;;  %v2081_v15 = vld [vmem:[#allocation7 + $0xb8] ss:$28 sps:$4 sm:$0xff]   ;;  %v2082_v16 = vld [vmem:[#allocation7 + $0x80] ss:$28 sps:$4 sm:$0xff]  }
 0x269   : > { %v726_v37 = vmax.f32 %v722_v29, 0.0  ;;  %v732_v46 = vadd.f32 1e-05, %v728_v32  ;;  %v745_v26 = vsub.f32 %v2623_v34, %v685_v20  ;;  %v2077_v34 = vld [vmem:[#allocation7 + $0x198] ss:$28 sps:$4 sm:$0xff]   ;;  %v806_v29 = vsub.s32 1, %v2597_v39 }
 0x26a   : > { %v725_v38 = vsub.f32 %v717_v30, %v721_v31  ;;  %v715_v40 = vmul.f32 0.125, %v701_v36  ;;  %v719_v41 = vmul.f32 %v683_v35, %v683_v35  ;;  %v743_v21 = vsub.f32 %v2629_v42, %v683_v35  ;;  %1894 = vmatprep.subr.bf16.mxu1 %v2077_v34  ;;  %v2084_v17 = vld [vmem:[#allocation7 + $0x10] ss:$28 sps:$4 sm:$0xff]   ;;  %v2085_v19 = vld [vmem:[#allocation7 + $0x19c] ss:$28 sps:$4 sm:$0xff]  }
 0x26b   : > { %v730_v44 = vadd.f32 1e-05, %v726_v37  ;;  %1895 = vmatpush3.bf16.msra.mxu1 %v2077_v34  ;;  %v2086_v20 = vld [vmem:[#allocation7 + $0x164] ss:$28 sps:$4 sm:$0xff]   ;;  %1914 = vmatprep.subr.bf16.mxu0 %v2085_v19  ;;  %v2087_v22 = vld [vmem:[#allocation7 + $0x12c] ss:$28 sps:$4 sm:$0xff]  }
 0x26c   : > { %v729_v45 = vmax.f32 %v725_v38, 0.0  ;;  %v723_v47 = vsub.f32 %v715_v40, %v719_v41  ;;  %1896 = vmatprep.subr.bf16.mxu1 %v2078_v14  ;;  %v2088_v25 = vld [vmem:[#allocation7 + $0xf4] ss:$28 sps:$4 sm:$0xff]   ;;  %v2089_v27 = vld [vmem:[#allocation7 + $0xbc] ss:$28 sps:$4 sm:$0xff]  }
 0x26d   : > { %2109 = vrsqrt.f32 %v730_v44  ;;  %v798_v30 = vld [vmem:[#allocation8 + $0x4] sm:$0x3] }
 0x26e   : > { %v733_v48 = vadd.f32 1e-05, %v729_v45  ;;  %v727_v49 = vmax.f32 %v723_v47, 0.0  ;;  %v807_v31 = vrot.slane %v798_v30, %v806_v29  ;;  %v2096_v29 = vld [vmem:[#allocation7 + $0xf8] ss:$28 sps:$4 sm:$0xff]  }
 0x26f   : > { %1897 = vmatpush3.bf16.msra.mxu1 %v2078_v14 }
 0x270   : > { %2111 = vrsqrt.f32 %v733_v48  ;;  %v731_v50 = vadd.f32 1e-05, %v727_v49  ;;  %1898 = vmatprep.subr.bf16.mxu1 %v2079_v24 }
 0x271   : > { %2113 = vrsqrt.f32 %v732_v46 }
 0x272   : > { %2115 = vrsqrt.f32 %v731_v50 }
 0x273   : > { %1899 = vmatpush3.bf16.msra.mxu1 %v2079_v24  ;;  %v1769_v24 = vld [vmem:[#allocation8 + $0x6] ss:$0 sm:$0xff] }
 0x274   : > { %1900 = vmatprep.subr.bf16.mxu1 %v2080_v18 }
 0x277   : > { %1901 = vmatpush3.bf16.msra.mxu1 %v2080_v18 }
 0x278   : > { %1902 = vmatprep.subr.bf16.mxu1 %v2081_v15 }
 0x27a   : > { %v2110_v51 = vpop.eup %2109 }
 0x27b   : > { %v738_v53 = vmul.f32 %v2110_v51, %v656_v52  ;;  %1903 = vmatpush3.bf16.msra.mxu1 %v2081_v15 }
 0x27c   : > { %1904 = vmatprep.subr.bf16.mxu1 %v2082_v16 }
 0x27d   : > { %v2112_v54 = vpop.eup %2111  ;;  %v749_v56 = vrot.slane %v738_v53, %v2600_v43 }
 0x27e   : > { %v2114_v55 = vpop.eup %2113  ;;  %v741_v59 = vmul.f32 %v2112_v54, %v656_v52 }
 0x27f   : > { %v2116_v60 = vpop.eup %2115  ;;  %v740_v61 = vmul.f32 %v2114_v55, %v656_v52  ;;  %v762_v62 = vmul.f32 %v749_v56, %v742_v57  ;;  %1905 = vmatpush3.bf16.msra.mxu1 %v2082_v16  ;;  %v943_v57 = vld [vmem:[%s2553_s29] sm:$0xff] }
 0x280   : > { %v739_v63 = vmul.f32 %v2116_v60, %v656_v52  ;;  %v761_v0 = vrot.slane %v741_v59, %v2600_v43  ;;  %v803_v59 = vrot.slane %v798_v30, %v2600_v43  ;;  %v944_v60 = vld [vmem:[%s2553_s29 + $0x8] sm:$0xff]  ;;  %v2097_v30 = vld [vmem:[#allocation7 + $0xc0] ss:$28 sps:$4 sm:$0xff]  }
 0x281   : > { %v757_v3 = vrot.slane %v740_v61, %v2600_v43  ;;  %v772_v58 = vadd.f32 %v1752_v2, %v762_v62 }
 0x282   : > { %v753_v1 = vrot.slane %v739_v63, %v2600_v43  ;;  %v765_v5 = vmul.f32 %v761_v0, %v745_v26 }
 0x283   : > { %v764_v7 = vmul.f32 %v757_v3, %v744_v28  ;;  %v776_v33 = vmax.f32 %v772_v58, 0.0  ;;  %v945_v58 = vld [vmem:[%s2553_s29 + $0x10] sm:$0xff] }
 0x284   : > { %v763_v4 = vmul.f32 %v753_v1, %v743_v21  ;;  %v775_v10 = vadd.f32 %v1752_v2, %v765_v5 }
 0x285   : > { %v774_v42 = vadd.f32 %v1752_v2, %v764_v7 }
 0x286   : > { %v773_v6 = vadd.f32 %v1752_v2, %v763_v4  ;;  %v779_v11 = vmax.f32 %v775_v10, 0.0  ;;  %v946_v4 = vld [vmem:[%s2553_s29 + $0x18] sm:$0xff] }
 0x287   : > { %v778_v12 = vmax.f32 %v774_v42, 0.0  ;;  %v2090_v42 = vld [vmem:[#allocation7 + $0x84] ss:$28 sps:$4 sm:$0xff]  }
 0x288   : > { %v777_v8 = vmax.f32 %v773_v6, 0.0 }
 0x289   : > { %v781_v13 = vpack.c.bf16 %v779_v11, %v778_v12  ;;  %v2091_v11 = vld [vmem:[#allocation7 + $0x4c] ss:$28 sps:$4 sm:$0xff]   ;;  %v2092_v12 = vld [vmem:[#allocation7 + $0x14] ss:$28 sps:$4 sm:$0xff]  }
 0x28a   : > { %v780_v9 = vpack.c.bf16 %v777_v8, %v776_v33 }
 0x28c   : > { %923 = vmatmul.mubr.bf16.vlgmr.msra.gmra.mxu0 %v780_v9 }
 0x28d   : > { %932 = vmatprep.mubr.bf16.mxu0 %v2337_v23  ;;  %v2083_v23 = vld [vmem:[#allocation7 + $0x48] ss:$28 sps:$4 sm:$0xff]   ;;  %1915 = vmatpush3.bf16.msra.mxu0 %v2085_v19 }
 0x28e   : > { %1906 = vmatprep.subr.bf16.mxu1 %v2083_v23  ;;  %1916 = vmatprep.subr.bf16.mxu0 %v2086_v20 }
 0x28f   : > { %1907 = vmatpush3.bf16.msra.mxu1 %v2083_v23 }
 0x290   : > { %1908 = vmatprep.subr.bf16.mxu1 %v2084_v17 }
 0x291   : > { %1917 = vmatpush3.bf16.msra.mxu0 %v2086_v20 }
 0x292   : > { %1918 = vmatprep.subr.bf16.mxu0 %v2087_v22 }
 0x293   : > { %1909 = vmatpush3.bf16.msra.mxu1 %v2084_v17 }
 0x294   : > { %933 = vmatmul.mubr.bf16.gmra.mxu0 %v781_v13 }
 0x295   : > { %1919 = vmatpush3.bf16.msra.mxu0 %v2087_v22  ;;  %v2093_v22 = vld [vmem:[#allocation7 + $0x1a0] ss:$28 sps:$4 sm:$0xff]  }
 0x296   : > { %1920 = vmatprep.subr.bf16.mxu0 %v2088_v25  ;;  %1934 = vmatprep.subr.bf16.mxu1 %v2093_v22 }
 0x299   : > { %1921 = vmatpush3.bf16.msra.mxu0 %v2088_v25  ;;  %v2094_v25 = vld [vmem:[#allocation7 + $0x168] ss:$28 sps:$4 sm:$0xff]  }
 0x29a   : > { %1922 = vmatprep.subr.bf16.mxu0 %v2089_v27 }
 0x29d   : > { %1923 = vmatpush3.bf16.msra.mxu0 %v2089_v27  ;;  %v2095_v27 = vld [vmem:[#allocation7 + $0x130] ss:$28 sps:$4 sm:$0xff]  }
 0x29e   : > { %1924 = vmatprep.subr.bf16.mxu0 %v2090_v42 }
 0x2a1   : > { %1925 = vmatpush3.bf16.msra.mxu0 %v2090_v42 }
 0x2a2   : > { %1926 = vmatprep.subr.bf16.mxu0 %v2091_v11 }
 0x2a5   : > { %1927 = vmatpush3.bf16.msra.mxu0 %v2091_v11 }
 0x2a6   : > { %1928 = vmatprep.subr.bf16.mxu0 %v2092_v12 }
 0x2a9   : > { %1929 = vmatpush3.bf16.msra.mxu0 %v2092_v12 }
 0x34c   : > { %v924_v32 = vpop.f32.mrf.mxu0 }
 0x34d   : > { %v925_v63 = vadd.f32 %v924_v32, %v803_v59  ;;  %v2099_v32 = vld [vmem:[#allocation7 + $0x50] ss:$28 sps:$4 sm:$0xff]  }
 0x34e   : > { %v926_v35 = vpop.f32.mrf.mxu0 }
 0x34f   : > { %v927_v36 = vadd.f32 %v926_v35, %v807_v31  ;;  %v2100_v35 = vld [vmem:[#allocation7 + $0x18] ss:$28 sps:$4 sm:$0xff]  }
 0x350   : > { %v928_v37 = vpop.f32.mrf.mxu0 }
 0x351   : > { %v947_v38 = vmul.f32 0.5, %v927_v36  ;;  %v929_v0 = vadd.f32 %v928_v37, %v803_v59 }
 0x352   : > { %v930_v40 = vpop.f32.mrf.mxu0 }
 0x353   : > { %v951_v41 = vmul.f32 1.442695, %v947_v38  ;;  %v931_v44 = vadd.f32 %v930_v40, %v807_v31 }
 0x354   : > { %v934_v45 = vpop.f32.mrf.mxu0 }
 0x355   : > { %2117 = vpow2.f32 %v951_v41  ;;  %v948_v46 = vmul.f32 0.5, %v931_v44  ;;  %v935_v6 = vadd.f32 %v934_v45, %v803_v59 }
 0x356   : > { %v936_v47 = vpop.f32.mrf.mxu0 }
 0x357   : > { %v953_v48 = vmul.f32 1.442695, %v948_v46  ;;  %v937_v49 = vadd.f32 %v936_v47, %v807_v31 }
 0x358   : > { %v938_v50 = vpop.f32.mrf.mxu0 }
 0x359   : > { %2119 = vpow2.f32 %v953_v48  ;;  %v949_v39 = vmul.f32 0.5, %v937_v49  ;;  %v939_v7 = vadd.f32 %v938_v50, %v803_v59 }
 0x35a   : > { %v940_v51 = vpop.f32.mrf.mxu0 }
 0x35b   : > { %v955_v52 = vmul.f32 1.442695, %v949_v39  ;;  %v941_v53 = vadd.f32 %v940_v51, %v807_v31  ;;  %v2098_v31 = vld [vmem:[#allocation7 + $0x88] ss:$28 sps:$4 sm:$0xff]  }
 0x35d   : > { %2121 = vpow2.f32 %v955_v52  ;;  %v950_v54 = vmul.f32 0.5, %v941_v53 }
 0x35f   : > { %v957_v55 = vmul.f32 1.442695, %v950_v54 }
 0x361   : > { %2123 = vpow2.f32 %v957_v55 }
 0x362   : > { %v2118_v56 = vpop.eup %2117 }
 0x363   : > { %v959_v61 = vmul.f32 %v2118_v56, %v943_v57 }
 0x365   : > { %v963_v1 = vadd.f32 %v959_v61, %v925_v63 }
 0x366   : > { %v2120_v62 = vpop.eup %2119 }
 0x367   : > { %v960_v21 = vmul.f32 %v2120_v62, %v944_v60 }
 0x369   : > { %v964_v2 = vadd.f32 %v960_v21, %v929_v0 }
 0x36a   : > { %v2122_v3 = vpop.eup %2121 }
 0x36b   : > { %v967_v26 = vpack.c.bf16 %v964_v2, %v963_v1  ;;  %v961_v28 = vmul.f32 %v2122_v3, %v945_v58 }
 0x36d   : > { %1910 = vmatprep.mubr.bf16.mxu1 %v967_v26  ;;  %v965_v8 = vadd.f32 %v961_v28, %v935_v6 }
 0x36e   : > { %v2124_v5 = vpop.eup %2123 }
 0x36f   : > { %v962_v33 = vmul.f32 %v2124_v5, %v946_v4 }
 0x371   : > { %v966_v9 = vadd.f32 %v962_v33, %v939_v7 }
 0x373   : > { %v968_v10 = vpack.c.bf16 %v966_v9, %v965_v8 }
 0x375   : > { %1911 = vmatmul.mubr.bf16.vlgmr.msra.gmra.mxu1 %v968_v10 }
 0x376   : > { %1935 = vmatpush3.bf16.msra.mxu1 %v2093_v22 }
 0x377   : > { %1936 = vmatprep.subr.bf16.mxu1 %v2094_v25 }
 0x37a   : > { %1937 = vmatpush3.bf16.msra.mxu1 %v2094_v25 }
 0x37b   : > { %1938 = vmatprep.subr.bf16.mxu1 %v2095_v27 }
 0x37e   : > { %1939 = vmatpush3.bf16.msra.mxu1 %v2095_v27 }
 0x37f   : > { %1940 = vmatprep.subr.bf16.mxu1 %v2096_v29 }
 0x382   : > { %1941 = vmatpush3.bf16.msra.mxu1 %v2096_v29 }
 0x383   : > { %1942 = vmatprep.subr.bf16.mxu1 %v2097_v30 }
 0x386   : > { %1943 = vmatpush3.bf16.msra.mxu1 %v2097_v30 }
 0x387   : > { %1944 = vmatprep.subr.bf16.mxu1 %v2098_v31 }
 0x38a   : > { %1945 = vmatpush3.bf16.msra.mxu1 %v2098_v31 }
 0x38b   : > { %1946 = vmatprep.subr.bf16.mxu1 %v2099_v32 }
 0x38e   : > { %1947 = vmatpush3.bf16.msra.mxu1 %v2099_v32 }
 0x38f   : > { %1948 = vmatprep.subr.bf16.mxu1 %v2100_v35 }
 0x392   : > { %1949 = vmatpush3.bf16.msra.mxu1 %v2100_v35 }
 0x435   : > { %v1912_v13 = vpop.f32.mrf.mxu1 }
 0x436   : > { %v1083_v17 = vadd.f32 %v1912_v13, %v1769_v24 }
 0x437   : > { %v1074_v34 = vpop.f32.mrf.mxu1 }
 0x438   : > { %v1075_v16 = vadd.f32 %v1769_v24, %v1074_v34 }
 0x439   : > { %v1913_v14 = vpop.f32.mrf.mxu1 }
 0x43a   : > { %v1086_v18 = vadd.f32 %v1913_v14, %v1769_v24 }
 0x43b   : > { %v1077_v15 = vpop.f32.mrf.mxu1 }
 0x43c   : > { %v1078_v23 = vadd.f32 %v1769_v24, %v1077_v15  ;;  %v1090_v20 = vpack.c.bf16 %v1086_v18, %v1083_v17 }
 0x43e   : > { %v1089_v19 = vpack.c.bf16 %v1078_v23, %v1075_v16 }
 0x440   : > { %1930 = vmatprep.mubr.bf16.mxu0 %v1089_v19 }
 0x441   : > { %1931 = vmatmul.mubr.bf16.vlgmr.msra.gmra.mxu0 %v1090_v20 }
 0x501   : > { %v2656_v36 = vpop.f32.mrf.mxu0 }
 0x502   : > { %v1218_v37 = vrot.slane %v2656_v36, 4  ;;  %v1236_v38 = vmul.f32 %v2656_v36, %v2656_v36 }
 0x503   : > { %v2661_v40 = vpop.f32.mrf.mxu0 }
 0x504   : > { %v1219_v41 = vadd.f32 %v2656_v36, %v1218_v37  ;;  %v1250_v44 = vrot.slane %v1236_v38, 4  ;;  %v1206_v45 = vrot.slane %v2661_v40, 4  ;;  %v1234_v46 = vmul.f32 %v2661_v40, %v2661_v40 }
 0x505   : > { %v2667_v47 = vpop.f32.mrf.mxu0 }
 0x506   : > { %v1220_v48 = vrot.slane %v1219_v41, 2  ;;  %v1251_v49 = vadd.f32 %v1250_v44, %v1236_v38  ;;  %v1207_v50 = vadd.f32 %v1206_v45, %v2661_v40  ;;  %v1238_v39 = vrot.slane %v1234_v46, 4 }
 0x507   : > { %v1224_v51 = vrot.slane %v2667_v47, 4  ;;  %v1237_v52 = vmul.f32 %v2667_v47, %v2667_v47  ;;  %v2673_v53 = vpop.f32.mrf.mxu0 }
 0x508   : > { %v1221_v54 = vadd.f32 %v1220_v48, %v1219_v41  ;;  %v1252_v55 = vrot.slane %v1251_v49, 2  ;;  %v1208_v56 = vrot.slane %v1207_v50, 2  ;;  %v1239_v57 = vadd.f32 %v1238_v39, %v1234_v46 }
 0x509   : > { %v1225_v59 = vadd.f32 %v2667_v47, %v1224_v51  ;;  %v1256_v60 = vrot.slane %v1237_v52, 4  ;;  %v1212_v61 = vrot.slane %v2673_v53, 4  ;;  %v1235_v62 = vmul.f32 %v2673_v53, %v2673_v53 }
 0x50a   : > { %v1222_v63 = vrot.slane %v1221_v54, 1  ;;  %v1253_v0 = vadd.f32 %v1252_v55, %v1251_v49  ;;  %v1209_v21 = vadd.f32 %v1208_v56, %v1207_v50  ;;  %v1240_v1 = vrot.slane %v1239_v57, 2 }
 0x50b   : > { %v1226_v2 = vrot.slane %v1225_v59, 2  ;;  %v1257_v3 = vadd.f32 %v1256_v60, %v1237_v52  ;;  %v1213_v58 = vadd.f32 %v1212_v61, %v2673_v53  ;;  %v1244_v26 = vrot.slane %v1235_v62, 4  ;;  %v1204_v60 = vld [vmem:[#allocation8 + $0x7] sm:$0x1] }
 0x50c   : > { %v1223_v4 = vadd.f32 %v1222_v63, %v1221_v54  ;;  %v1254_v28 = vrot.slane %v1253_v0, 1  ;;  %v1210_v5 = vrot.slane %v1209_v21, 1  ;;  %v1241_v6 = vadd.f32 %v1240_v1, %v1239_v57 }
 0x50d   : > { %v1227_v7 = vadd.f32 %v1226_v2, %v1225_v59  ;;  %v1258_v33 = vrot.slane %v1257_v3, 2  ;;  %v1214_v8 = vrot.slane %v1213_v58, 2  ;;  %v1245_v9 = vadd.f32 %v1244_v26, %v1235_v62 }
 0x50e   : > { %v1232_v10 = vmul.f32 0.125, %v1223_v4  ;;  %v1255_v42 = vadd.f32 %v1254_v28, %v1253_v0  ;;  %v1211_v11 = vadd.f32 %v1210_v5, %v1209_v21  ;;  %v1242_v12 = vrot.slane %v1241_v6, 1 }
 0x50f   : > { %v1228_v13 = vrot.slane %v1227_v7, 1  ;;  %v1259_v34 = vadd.f32 %v1258_v33, %v1257_v3  ;;  %v1215_v14 = vadd.f32 %v1214_v8, %v1213_v58  ;;  %v1246_v24 = vrot.slane %v1245_v9, 2  ;;  %v1786_v33 = vld [vmem:[#allocation8 + $0x8] ss:$0 sm:$0xff] }
 0x510   : > { %v1264_v18 = vmul.f32 0.125, %v1255_v42  ;;  %v1268_v15 = vmul.f32 %v1232_v10, %v1232_v10  ;;  %v1230_v16 = vmul.f32 0.125, %v1211_v11  ;;  %v1243_v23 = vadd.f32 %v1242_v12, %v1241_v6 }
 0x511   : > { %v1229_v17 = vadd.f32 %v1228_v13, %v1227_v7  ;;  %v1260_v19 = vrot.slane %v1259_v34, 1  ;;  %v1216_v20 = vrot.slane %v1215_v14, 1  ;;  %v1247_v27 = vadd.f32 %v1246_v24, %v1245_v9 }
 0x512   : > { %v1272_v22 = vsub.f32 %v1264_v18, %v1268_v15  ;;  %v1266_v25 = vmul.f32 %v1230_v16, %v1230_v16  ;;  %v1262_v29 = vmul.f32 0.125, %v1243_v23  ;;  %v1292_v2 = vsub.f32 %v2656_v36, %v1232_v10 }
 0x513   : > { %v1233_v30 = vmul.f32 0.125, %v1229_v17  ;;  %v1261_v31 = vadd.f32 %v1260_v19, %v1259_v34  ;;  %v1217_v32 = vadd.f32 %v1216_v20, %v1215_v14  ;;  %v1248_v37 = vrot.slane %v1247_v27, 1 }
 0x514   : > { %v1276_v35 = vmax.f32 %v1272_v22, 0.0  ;;  %v1270_v38 = vsub.f32 %v1262_v29, %v1266_v25  ;;  %v1290_v3 = vsub.f32 %v2661_v40, %v1230_v16 }
 0x515   : > { %v1265_v41 = vmul.f32 0.125, %v1261_v31  ;;  %v1269_v44 = vmul.f32 %v1233_v30, %v1233_v30  ;;  %v1231_v46 = vmul.f32 0.125, %v1217_v32  ;;  %v1249_v48 = vadd.f32 %v1248_v37, %v1247_v27 }
 0x516   : > { %v1280_v45 = vadd.f32 1e-05, %v1276_v35  ;;  %v1274_v49 = vmax.f32 %v1270_v38, 0.0  ;;  %v1293_v6 = vsub.f32 %v2667_v47, %v1233_v30 }
 0x517   : > { %v1273_v50 = vsub.f32 %v1265_v41, %v1269_v44  ;;  %v1263_v39 = vmul.f32 0.125, %v1249_v48  ;;  %v1267_v51 = vmul.f32 %v1231_v46, %v1231_v46  ;;  %v1291_v42 = vsub.f32 %v2673_v53, %v1231_v46 }
 0x518   : > { %2125 = vrsqrt.f32 %v1280_v45  ;;  %v1278_v52 = vadd.f32 1e-05, %v1274_v49 }
 0x519   : > { %v1277_v54 = vmax.f32 %v1273_v50, 0.0  ;;  %v1271_v55 = vsub.f32 %v1263_v39, %v1267_v51 }
 0x51a   : > { %2127 = vrsqrt.f32 %v1278_v52 }
 0x51b   : > { %v1281_v56 = vadd.f32 1e-05, %v1277_v54  ;;  %v1275_v57 = vmax.f32 %v1271_v55, 0.0 }
 0x51d   : > { %2129 = vrsqrt.f32 %v1281_v56  ;;  %v1279_v59 = vadd.f32 1e-05, %v1275_v57 }
 0x51f   : > { %2131 = vrsqrt.f32 %v1279_v59 }
 0x525   : > { %v2126_v61 = vpop.eup %2125 }
 0x526   : > { %v1288_v62 = vmul.f32 %v2126_v61, %v1204_v60 }
 0x527   : > { %v2128_v63 = vpop.eup %2127 }
 0x528   : > { %v1305_v0 = vrot.slane %v1288_v62, %v2600_v43  ;;  %v1286_v21 = vmul.f32 %v2128_v63, %v1204_v60 }
 0x52a   : > { %v2130_v1 = vpop.eup %2129  ;;  %v1297_v58 = vrot.slane %v1286_v21, %v2600_v43  ;;  %v1312_v28 = vmul.f32 %v1305_v0, %v1292_v2 }
 0x52b   : > { %v1289_v26 = vmul.f32 %v2130_v1, %v1204_v60 }
 0x52c   : > { %v2132_v4 = vpop.eup %2131  ;;  %v1310_v5 = vmul.f32 %v1297_v58, %v1290_v3  ;;  %v1322_v10 = vadd.f32 %v1786_v33, %v1312_v28 }
 0x52d   : > { %v1309_v7 = vrot.slane %v1289_v26, %v2600_v43  ;;  %v1287_v8 = vmul.f32 %v2132_v4, %v1204_v60 }
 0x52e   : > { %v1320_v36 = vadd.f32 %v1786_v33, %v1310_v5  ;;  %v1330_v24 = vmul.f32 0.01, %v1322_v10  ;;  %vm1326_vm3 = vcmp.gt.f32.partialorder %v1322_v10, 0.0 }
 0x52f   : > { %v1313_v9 = vmul.f32 %v1309_v7, %v1293_v6  ;;  %v1301_v11 = vrot.slane %v1287_v8, %v2600_v43 }
 0x530   : > { %v1328_v14 = vmul.f32 0.01, %v1320_v36  ;;  %vm1324_vm1 = vcmp.gt.f32.partialorder %v1320_v36, 0.0  ;;  %v1334_v53 = vsel %vm1326_vm3, %v1322_v10, %v1330_v24 }
 0x531   : > { %v1323_v40 = vadd.f32 %v1786_v33, %v1313_v9  ;;  %v1311_v12 = vmul.f32 %v1301_v11, %v1291_v42 }
 0x532   : > { %v1332_v15 = vsel %vm1324_vm1, %v1320_v36, %v1328_v14 }
 0x533   : > { %v1331_v13 = vmul.f32 0.01, %v1323_v40  ;;  %v1321_v34 = vadd.f32 %v1786_v33, %v1311_v12  ;;  %vm1327_vm0 = vcmp.gt.f32.partialorder %v1323_v40, 0.0 }
 0x535   : > { %vm1325_vm2 = vcmp.gt.f32.partialorder %v1321_v34, 0.0  ;;  %v1329_v47 = vmul.f32 0.01, %v1321_v34  ;;  %v1335_v18 = vsel %vm1327_vm0, %v1323_v40, %v1331_v13 }
 0x536   : > { %v1337_v17 = vpack.c.bf16 %v1335_v18, %v1334_v53 }
 0x537   : > { %v1333_v16 = vsel %vm1325_vm2, %v1321_v34, %v1329_v47 }
 0x538   : > { %v1336_v23 = vpack.c.bf16 %v1333_v16, %v1332_v15 }
 0x53a   : > { %1950 = vmatprep.mubr.bf16.mxu1 %v1336_v23 }
 0x53b   : > { %1951 = vmatmul.mubr.bf16.vlgmr.msra.gmra.mxu1 %v1337_v17 }
 0x5fb   : > { %v2688_v19 = vpop.f32.mrf.mxu1 }
 0x5fc   : > { %v1465_v20 = vrot.slane %v2688_v19, 4  ;;  %v1483_v22 = vmul.f32 %v2688_v19, %v2688_v19 }
 0x5fd   : > { %v2693_v25 = vpop.f32.mrf.mxu1 }
 0x5fe   : > { %v1466_v27 = vadd.f32 %v2688_v19, %v1465_v20  ;;  %v1497_v29 = vrot.slane %v1483_v22, 4  ;;  %v1453_v30 = vrot.slane %v2693_v25, 4  ;;  %v1481_v31 = vmul.f32 %v2693_v25, %v2693_v25 }
 0x5ff   : > { %v2699_v32 = vpop.f32.mrf.mxu1 }
 0x600   : > { %v1467_v35 = vrot.slane %v1466_v27, 2  ;;  %v1498_v37 = vadd.f32 %v1497_v29, %v1483_v22  ;;  %v1454_v38 = vadd.f32 %v1453_v30, %v2693_v25  ;;  %v1485_v41 = vrot.slane %v1481_v31, 4 }
 0x601   : > { %v1471_v44 = vrot.slane %v2699_v32, 4  ;;  %v1484_v45 = vmul.f32 %v2699_v32, %v2699_v32  ;;  %v2705_v46 = vpop.f32.mrf.mxu1 }
 0x602   : > { %v1468_v48 = vadd.f32 %v1467_v35, %v1466_v27  ;;  %v1499_v49 = vrot.slane %v1498_v37, 2  ;;  %v1455_v50 = vrot.slane %v1454_v38, 2  ;;  %v1486_v39 = vadd.f32 %v1485_v41, %v1481_v31 }
 0x603   : > { %v1472_v51 = vadd.f32 %v2699_v32, %v1471_v44  ;;  %v1503_v52 = vrot.slane %v1484_v45, 4  ;;  %v1459_v54 = vrot.slane %v2705_v46, 4  ;;  %v1482_v55 = vmul.f32 %v2705_v46, %v2705_v46 }
 0x604   : > { %v1469_v56 = vrot.slane %v1468_v48, 1  ;;  %v1500_v57 = vadd.f32 %v1499_v49, %v1498_v37  ;;  %v1456_v59 = vadd.f32 %v1455_v50, %v1454_v38  ;;  %v1487_v60 = vrot.slane %v1486_v39, 2 }
 0x605   : > { %v1473_v61 = vrot.slane %v1472_v51, 2  ;;  %v1504_v62 = vadd.f32 %v1503_v52, %v1484_v45  ;;  %v1460_v63 = vadd.f32 %v1459_v54, %v2705_v46  ;;  %v1491_v0 = vrot.slane %v1482_v55, 4  ;;  %v1451_v52 = vld [vmem:[#allocation8 + $0x9] sm:$0x1] }
 0x606   : > { %v1470_v21 = vadd.f32 %v1469_v56, %v1468_v48  ;;  %v1501_v1 = vrot.slane %v1500_v57, 1  ;;  %v1457_v2 = vrot.slane %v1456_v59, 1  ;;  %v1488_v3 = vadd.f32 %v1487_v60, %v1486_v39  ;;  %v1795_v60 = vld [vmem:[#allocation8 + $0xa] ss:$0 sm:$0xff] }
 0x607   : > { %v1474_v58 = vadd.f32 %v1473_v61, %v1472_v51  ;;  %v1505_v26 = vrot.slane %v1504_v62, 2  ;;  %v1461_v4 = vrot.slane %v1460_v63, 2  ;;  %v1492_v28 = vadd.f32 %v1491_v0, %v1482_v55 }
 0x608   : > { %v1479_v5 = vmul.f32 0.125, %v1470_v21  ;;  %v1502_v6 = vadd.f32 %v1501_v1, %v1500_v57  ;;  %v1458_v7 = vadd.f32 %v1457_v2, %v1456_v59  ;;  %v1489_v33 = vrot.slane %v1488_v3, 1 }
 0x609   : > { %v1475_v8 = vrot.slane %v1474_v58, 1  ;;  %v1506_v9 = vadd.f32 %v1505_v26, %v1504_v62  ;;  %v1462_v42 = vadd.f32 %v1461_v4, %v1460_v63  ;;  %v1493_v11 = vrot.slane %v1492_v28, 2 }
 0x60a   : > { %v1511_v36 = vmul.f32 0.125, %v1502_v6  ;;  %v1515_v10 = vmul.f32 %v1479_v5, %v1479_v5  ;;  %v1477_v40 = vmul.f32 0.125, %v1458_v7  ;;  %v1490_v12 = vadd.f32 %v1489_v33, %v1488_v3 }
 0x60b   : > { %v1476_v13 = vadd.f32 %v1475_v8, %v1474_v58  ;;  %v1507_v34 = vrot.slane %v1506_v9, 1  ;;  %v1463_v14 = vrot.slane %v1462_v42, 1  ;;  %v1494_v18 = vadd.f32 %v1493_v11, %v1492_v28 }
 0x60c   : > { %v1519_v24 = vsub.f32 %v1511_v36, %v1515_v10  ;;  %v1513_v47 = vmul.f32 %v1477_v40, %v1477_v40  ;;  %v1509_v15 = vmul.f32 0.125, %v1490_v12  ;;  %v1539_v57 = vsub.f32 %v2688_v19, %v1479_v5 }
 0x60d   : > { %v1480_v16 = vmul.f32 0.125, %v1476_v13  ;;  %v1508_v23 = vadd.f32 %v1507_v34, %v1506_v9  ;;  %v1464_v53 = vadd.f32 %v1463_v14, %v1462_v42  ;;  %v1495_v20 = vrot.slane %v1494_v18, 1 }
 0x60e   : > { %v1523_v17 = vmax.f32 %v1519_v24, 0.0  ;;  %v1517_v22 = vsub.f32 %v1509_v15, %v1513_v47  ;;  %v1537_v0 = vsub.f32 %v2693_v25, %v1477_v40 }
 0x60f   : > { %v1512_v27 = vmul.f32 0.125, %v1508_v23  ;;  %v1516_v29 = vmul.f32 %v1480_v16, %v1480_v16  ;;  %v1478_v31 = vmul.f32 0.125, %v1464_v53  ;;  %v1496_v35 = vadd.f32 %v1495_v20, %v1494_v18 }
 0x610   : > { %v1527_v30 = vadd.f32 1e-05, %v1523_v17  ;;  %v1521_v37 = vmax.f32 %v1517_v22, 0.0  ;;  %v1540_v26 = vsub.f32 %v2699_v32, %v1480_v16 }
 0x611   : > { %v1520_v38 = vsub.f32 %v1512_v27, %v1516_v29  ;;  %v1510_v41 = vmul.f32 0.125, %v1496_v35  ;;  %v1514_v44 = vmul.f32 %v1478_v31, %v1478_v31  ;;  %v1538_v25 = vsub.f32 %v2705_v46, %v1478_v31 }
 0x612   : > { %2133 = vrsqrt.f32 %v1527_v30  ;;  %v1525_v45 = vadd.f32 1e-05, %v1521_v37 }
 0x613   : > { %v1524_v48 = vmax.f32 %v1520_v38, 0.0  ;;  %v1518_v49 = vsub.f32 %v1510_v41, %v1514_v44 }
 0x614   : > { %2135 = vrsqrt.f32 %v1525_v45 }
 0x615   : > { %v1528_v50 = vadd.f32 1e-05, %v1524_v48  ;;  %v1522_v39 = vmax.f32 %v1518_v49, 0.0 }
 0x617   : > { %2137 = vrsqrt.f32 %v1528_v50  ;;  %v1526_v51 = vadd.f32 1e-05, %v1522_v39 }
 0x619   : > { %2139 = vrsqrt.f32 %v1526_v51 }
 0x61f   : > { %v2134_v54 = vpop.eup %2133 }
 0x620   : > { %v1535_v55 = vmul.f32 %v2134_v54, %v1451_v52 }
 0x621   : > { %v2136_v56 = vpop.eup %2135 }
 0x622   : > { %v1552_v59 = vrot.slane %v1535_v55, %v2600_v43  ;;  %v1533_v61 = vmul.f32 %v2136_v56, %v1451_v52 }
 0x624   : > { %v2138_v62 = vpop.eup %2137  ;;  %v1559_v63 = vmul.f32 %v1552_v59, %v1539_v57  ;;  %v1544_v21 = vrot.slane %v1533_v61, %v2600_v43 }
 0x625   : > { %v1536_v1 = vmul.f32 %v2138_v62, %v1451_v52 }
 0x626   : > { %v1569_v2 = vadd.f32 %v1795_v60, %v1559_v63  ;;  %v2140_v3 = vpop.eup %2139  ;;  %v1557_v58 = vmul.f32 %v1544_v21, %v1537_v0 }
 0x627   : > { %v1556_v4 = vrot.slane %v1536_v1, %v2600_v43  ;;  %v1534_v28 = vmul.f32 %v2140_v3, %v1451_v52 }
 0x628   : > { %vm1573_vm4 = vcmp.gt.f32.partialorder %v1569_v2, 0.0  ;;  %v1577_v19 = vmul.f32 0.01, %v1569_v2  ;;  %v1567_v5 = vadd.f32 %v1795_v60, %v1557_v58 }
 0x629   : > { %v1560_v6 = vmul.f32 %v1556_v4, %v1540_v26  ;;  %v1548_v33 = vrot.slane %v1534_v28, %v2600_v43 }
 0x62a   : > { %v1581_v7 = vsel %vm1573_vm4, %v1569_v2, %v1577_v19  ;;  %vm1571_vm5 = vcmp.gt.f32.partialorder %v1567_v5, 0.0  ;;  %v1575_v8 = vmul.f32 0.01, %v1567_v5 }
 0x62b   : > { %1585 = vst [vmem:[%s282_s21 + $0x10] sm:$0xff] %v1581_v7  ;;  %v1570_v9 = vadd.f32 %v1795_v60, %v1560_v6  ;;  %v1558_v32 = vmul.f32 %v1548_v33, %v1538_v25 }
 0x62c   : > { %v1579_v42 = vsel %vm1571_vm5, %v1567_v5, %v1575_v8 }
 0x62d   : > { %vm1574_vm6 = vcmp.gt.f32.partialorder %v1570_v9, 0.0  ;;  %v1578_v11 = vmul.f32 0.01, %v1570_v9  ;;  %1583 = vst [vmem:[%s282_s21] sm:$0xff] %v1579_v42  ;;  %v1568_v36 = vadd.f32 %v1795_v60, %v1558_v32 }
 0x62f   : > { %v1582_v10 = vsel %vm1574_vm6, %v1570_v9, %v1578_v11  ;;  %vm1572_vm7 = vcmp.gt.f32.partialorder %v1568_v36, 0.0  ;;  %v1576_v43 = vmul.f32 0.01, %v1568_v36 }
 0x630   : > { %1586 = vst [vmem:[%s282_s21 + $0x18] sm:$0xff] %v1582_v10 }
 0x631   : > { %v1580_v46 = vsel %vm1572_vm7, %v1568_v36, %v1576_v43 }
 0x632   : > { %1584 = vst [vmem:[%s282_s21 + $0x8] sm:$0xff] %v1580_v46 }
 0x633   : > { %2262 = shalt.err (!%p2259_p6)
}
 0x634   : > { %s2263_s27 = scalar_lea.hbm %s2726_s8, 512  ;;  %s2267_s30 = scalar_lea.hbm %s2775_s4, 1024 }
 0x635   : > { %p2264_p1 = scmp.ne.s32.totalorder %s2726_s8, %s2263_s27  ;;  %p2268_p11 = scmp.lt.s32.totalorder %s2726_s8, %s2775_s4 }
 0x636   : > { %p2269_p9 = scmp.lt.s32.totalorder %s2267_s30, %s2263_s27 }
 0x637   : > { %p2265_p10 = pnand %p2264_p1, %p2795_p13 }
 0x638   : > { %p2270_p12 = por %p2269_p9, %p2268_p11 }
 0x639   : > { %p2266_p8 = pneg %p2265_p10 }
 0x63b   : > { %p2271_p7 = pnand %p2270_p12, %p2266_p8 }
 0x63d   : > { %2274 = shalt.err (!%p2271_p7)
}
 0x63e   : > { %s2339_s7 = smov 128   ;;  %s2340_s29 = smov 8  }
 0x63f   : > { %1966 = dma.vmem_to_hbm [thread:$0]  (%p2795_p13), %s2728_s6, 512, %s2726_s8, %s1588_s19, %s2339_s7, %s2339_s7, %s2340_s29  }
 0x640 PF: > { %s1616_s21 = sand.u32 1, %s2313_s15   ;;  %p2796_p0 = scmp.ne.s32.totalorder %s2782_s22, 0 }
 0x641   : > { %p2797_p5 = scmp.ge.s32.totalorder %s2325_s18, 2  ;;  %s1617_s11 = scalar_lea.sflag [#allocation4], %s1616_s21 }
 0x643   : > { %p1983_p3 = pnand %p2797_p5, %p2796_p0 }
 0x645   : > { %p1984_p2 = pneg %p1983_p3 }
 0x647   : > { %2308 = dma.done.wait (%p1984_p2), %s1617_s11, 512  }
 0x648   : > { %2310 = vsyncadd (%p1984_p2), %s1617_s11, 4294966784  ;;  %p21_p4 = scmp.ge.s32.totalorder %s2438_s12, 4   ;;  %s2798_s15 = smov %s2317_s16 }
 0x649   : > { %s2799_s16 = smov %s2321_s17  ;;  %s2800_s17 = smov %s2454_s24 }
 0x64a   : > { %s2801_s18 = smov %s2438_s12  ;;  %23 = sbr.rel (!%p21_p4) target bundleno = 11 (0xb), region = 102 }
 0x64f   :  { %1622 = vsyncpa [#allocation3], 1 }
 0x650   :  { %1624 = vsyncpa [#allocation3 + $0x1], 1 }
 0x651   :  { %1625 = vsyncpa [#allocation6], 1 }
 0x652   :  { %1627 = vsyncpa [#allocation6 + $0x1], 1 }
 0x653   :  { %1628 = vsyncpa [#allocation9], 1 }
 0x654   :  { %1629 = vsyncpa [#allocation4], 1 }
 0x655   :  { %1631 = vsyncpa [#allocation4 + $0x1], 1 }

</bundles_post_ra>
